<compile_context>
chip_gen: v7x
topology: tpu7x:2x2x1
jax: 0.10.0
libtpu: 0.0.40
codegen_flags: <defaults>
</compile_context>

<pallas_src>
import functools

import jax
import jax.numpy as jnp
from jax.experimental import pallas as pl
from jax.experimental.pallas import tpu as pltpu


# ---------------------------------------------------------------- fused kernel
def fused_receiver_kernel(msg_ref, emb_w_ref, img_ref,
                          wih_ref, whh_ref, b_ref,
                          w1h_ref, wimgf_ref, bfold_ref,
                          w2_ref, b2_ref,
                          pred_ref, emb_ref):
    B, L, V = msg_ref.shape
    Hp = whh_ref.shape[0]          # lane-padded hidden size (multiple of 128)
    G = 4 * Hp
    E = emb_ref.shape[-1]

    # ---- hoisted: embedding + input projection for ALL timesteps (2 matmuls)
    msg2 = msg_ref[...].reshape(B * L, V)                       # layout no-op
    x_all = jnp.dot(msg2, emb_w_ref[...],
                    preferred_element_type=jnp.float32)         # (B*L, E)
    emb_ref[...] = x_all.reshape(B, L, E)                       # one dense store

    b_bcast = jnp.broadcast_to(b_ref[...], (B * L, G))          # hoisted broadcast
    gx = (jnp.dot(x_all, wih_ref[...], preferred_element_type=jnp.float32)
          + b_bcast).reshape(B, L, G)                           # (B, L, 4*Hp)

    # ---- serial LSTM recurrence: only h @ w_hh stays in the loop (bf16 on MXU)
    whh_bf = whh_ref[...].astype(jnp.bfloat16)                  # hoisted cast
    h = jnp.zeros((B, Hp), jnp.float32)
    c = jnp.zeros((B, Hp), jnp.float32)
    for t in range(L):             # fully unrolled static time loop (L small)
        gates = gx[:, t, :] + jnp.dot(h.astype(jnp.bfloat16), whh_bf,
                                      preferred_element_type=jnp.float32)
        # gate slabs are pre-reordered to (i, f, o, g): one sigmoid + one tanh
        sig = jax.nn.sigmoid(gates[:, :3 * Hp])
        g_g = jnp.tanh(gates[:, 3 * Hp:])
        i_g = sig[:, 0 * Hp:1 * Hp]
        f_g = sig[:, 1 * Hp:2 * Hp]
        o_g = sig[:, 2 * Hp:3 * Hp]
        c = f_g * c + i_g * g_g
        h = o_g * jnp.tanh(c)      # padded lanes stay exactly 0

    # ---- head: visual Linear folded into first head layer offline
    # hid = ReLU(h @ W1_h + img @ (w_img @ W1_i) + (b_img @ W1_i + b1))
    hid = (jnp.dot(h, w1h_ref[...], preferred_element_type=jnp.float32)
           + jnp.dot(img_ref[...], wimgf_ref[...],
                     preferred_element_type=jnp.float32)
           + bfold_ref[...])
    hid = jnp.maximum(hid, 0.0)                                 # ReLU
    pred_ref[...] = jnp.dot(hid, w2_ref[...],
                            preferred_element_type=jnp.float32) + b2_ref[...]


# ---------------------------------------------------------------- wrapper
def obverter_receiver_forward(image_representation, messages, kparams,
                              *, hidden_size):
    B, L, V = messages.shape
    E = kparams["embedding"].shape[1]
    H = hidden_size
    Hp = kparams["w_hh_pad"].shape[0]
    M = image_representation.shape[1]

    full2 = lambda i: (0, 0)
    full3 = lambda i: (0, 0, 0)

    prediction, emb = pl.pallas_call(
        fused_receiver_kernel,
        out_shape=(jax.ShapeDtypeStruct((B, 2), jnp.float32),
                   jax.ShapeDtypeStruct((B, L, E), jnp.float32)),
        grid=(1,),
        in_specs=[pl.BlockSpec((B, L, V), full3),        # messages
                  pl.BlockSpec((V, E), full2),           # embedding table
                  pl.BlockSpec((B, M), full2),           # image representation
                  pl.BlockSpec((E, 4 * Hp), full2),      # w_ih (padded, reordered)
                  pl.BlockSpec((Hp, 4 * Hp), full2),     # w_hh (padded, reordered)
                  pl.BlockSpec((1, 4 * Hp), full2),      # lstm bias (padded, reordered)
                  pl.BlockSpec((Hp, H), full2),          # w1_h (padded rows)
                  pl.BlockSpec((M, H), full2),           # w_img @ w1_i (folded)
                  pl.BlockSpec((1, H), full2),           # folded bias
                  pl.BlockSpec((H, 2), full2),           # w2
                  pl.BlockSpec((1, 2), full2)],          # b2
        out_specs=(pl.BlockSpec((B, 2), full2),
                   pl.BlockSpec((B, L, E), full3)),
        compiler_params=pltpu.CompilerParams(
            dimension_semantics=("arbitrary",)),
    )(messages, kparams["embedding"], image_representation,
      kparams["w_ih_pad"], kparams["w_hh_pad"], kparams["b_lstm_pad"],
      kparams["w1_h_pad"], kparams["w_img_fold"], kparams["b_fold"],
      kparams["w2"], kparams["b2"])

    return prediction, emb


# ---------------------------------------------------------------- param prep (done once, outside jit)
def pad_params_for_kernel(params, *, hidden_size):
    """Lane-pad each LSTM gate slab to a full 128-lane tile, reorder the slabs
    from PyTorch (i, f, g, o) to (i, f, o, g), and fold the visual-module
    Linear into the first head layer.  Zero weights/bias in padded lanes keep
    padded h/c lanes exactly 0, so numerics match the unpadded reference."""
    H = hidden_size
    Hp = ((H + 127) // 128) * 128
    SRC = (0, 1, 3, 2)   # kernel slab s <- PyTorch gate SRC[s]  ((i,f,g,o) -> (i,f,o,g))

    def pad_gate_cols(w):                                  # [D, 4H] -> [D, 4Hp]
        D = w.shape[0]
        out = jnp.zeros((D, 4 * Hp), jnp.float32)
        for s, g in enumerate(SRC):
            out = out.at[:, s * Hp:s * Hp + H].set(w[:, g * H:(g + 1) * H])
        return out

    w_ih_pad = pad_gate_cols(params["w_ih_t"])                              # (E, 4Hp)
    w_hh_pad = jnp.zeros((Hp, 4 * Hp), jnp.float32).at[:H, :].set(
        pad_gate_cols(params["w_hh_t"]))                                    # (Hp, 4Hp)
    b_lstm_pad = pad_gate_cols(params["b_lstm"])                            # (1, 4Hp)
    w1_h_pad = jnp.zeros((Hp, H), jnp.float32).at[:H, :].set(params["w1_h"])

    # Fold ObverterMetaVisualModule Linear into the head (linear composition).
    w_img_fold = params["w_img"] @ params["w1_i"]                           # (M, H)
    b_fold = params["b_img"] @ params["w1_i"] + params["b1"]                # (1, H)

    kp = dict(params)
    kp.update(w_ih_pad=w_ih_pad, w_hh_pad=w_hh_pad, b_lstm_pad=b_lstm_pad,
              w1_h_pad=w1_h_pad, w_img_fold=w_img_fold, b_fold=b_fold)
    return kp


# ---------------------------------------------------------------- pure-JAX reference (unpadded params, f32)
def reference_forward(image_representation, messages, params, *, hidden_size):
    B, L, V = messages.shape
    H = hidden_size
    emb = messages @ params["embedding"]
    h = jnp.zeros((B, H), jnp.float32)
    c = jnp.zeros((B, H), jnp.float32)
    for t in range(L):
        x = emb[:, t, :]
        gates = x @ params["w_ih_t"] + h @ params["w_hh_t"] + params["b_lstm"]
        i = jax.nn.sigmoid(gates[:, 0 * H:1 * H])
        f = jax.nn.sigmoid(gates[:, 1 * H:2 * H])
        g = jnp.tanh(gates[:, 2 * H:3 * H])
        o = jax.nn.sigmoid(gates[:, 3 * H:4 * H])
        c = f * c + i * g
        h = o * jnp.tanh(c)
    img = image_representation @ params["w_img"] + params["b_img"]
    hid = jnp.maximum(h @ params["w1_h"] + img @ params["w1_i"] + params["b1"], 0.0)
    pred = hid @ params["w2"] + params["b2"]
    return pred, emb


# ---------------------------------------------------------------- parameter init (deterministic, mirrors shapes in __init__)
def init_params(key, *, vocab_size, embedding_size, hidden_size, meta_vocab_size):
    V, E, H, M = vocab_size, embedding_size, hidden_size, meta_vocab_size
    ks = jax.random.split(key, 8)

    embedding = 0.1 * jax.random.normal(ks[0], (V, E), jnp.float32)      # normal_(0, 0.1)

    # LSTMCell: weight_ih [4H, E] (xavier-ish), weight_hh [4H, H]; stored pre-transposed.
    w_ih = jax.random.normal(ks[1], (4 * H, E), jnp.float32) * (2.0 / (4 * H + E)) ** 0.5
    w_hh = jax.random.normal(ks[2], (4 * H, H), jnp.float32) * (1.0 / H) ** 0.5
    b_ih = jnp.zeros((4 * H,), jnp.float32)
    b_hh = jnp.zeros((4 * H,), jnp.float32).at[H:2 * H].set(1.0)         # forget-gate bias = 1

    # ObverterMetaVisualModule: Linear(M, H)
    w_img = jax.random.normal(ks[3], (M, H), jnp.float32) * (1.0 / M) ** 0.5
    b_img = jnp.zeros((1, H), jnp.float32)

    # output_layer: Linear(2H, H) split into h-part / img-part, then Linear(H, 2)
    w1 = jax.random.normal(ks[4], (2 * H, H), jnp.float32) * (1.0 / (2 * H)) ** 0.5
    b1 = jnp.zeros((1, H), jnp.float32)
    w2 = jax.random.normal(ks[5], (H, 2), jnp.float32) * (1.0 / H) ** 0.5
    b2 = jnp.zeros((1, 2), jnp.float32)

    return {
        "embedding": embedding,
        "w_ih_t": w_ih.T,                                   # [E, 4H]
        "w_hh_t": w_hh.T,                                   # [H, 4H]
        "b_lstm": (b_ih + b_hh).reshape(1, 4 * H),          # [1, 4H]
        "w_img": w_img, "b_img": b_img,
        "w1_h": w1[:H, :], "w1_i": w1[H:, :], "b1": b1,
        "w2": w2, "b2": b2,
    }


if __name__ == "__main__":
    B, L = 2, 8               # batch, sequence length
    V, E, H = 10, 32, 64      # vocab, embedding, hidden
    M = 13                    # meta_vocab_size (dataset_type='meta')

    key = jax.random.PRNGKey(0)
    k_p, k_msg, k_img = jax.random.split(key, 3)

    params = init_params(k_p, vocab_size=V, embedding_size=E,
                         hidden_size=H, meta_vocab_size=M)
    kparams = jax.tree_util.tree_map(
        jnp.asarray, pad_params_for_kernel(params, hidden_size=H))

    # training-path messages: one-hot token distributions [B, L, V]
    token_ids = jax.random.randint(k_msg, (B, L), 0, V)
    messages = jax.nn.one_hot(token_ids, V, dtype=jnp.float32)
    image_representation = jax.random.normal(k_img, (B, M), jnp.float32)

    fwd = jax.jit(functools.partial(obverter_receiver_forward, hidden_size=H))
    prediction, emb = fwd(image_representation, messages, kparams)
    jax.block_until_ready((prediction, emb))

    ref_pred, ref_emb = reference_forward(image_representation, messages, params,
                                          hidden_size=H)
    assert prediction.shape == (B, 2) and emb.shape == (B, L, E)
    # emb path is pure f32 -> tight tolerance; recurrence uses bf16 MXU matmuls
    # for h @ w_hh -> looser tolerance on the prediction vs the f32 reference.
    assert jnp.allclose(emb, ref_emb, atol=1e-5, rtol=1e-5)
    assert jnp.allclose(prediction, ref_pred, atol=5e-2, rtol=5e-2)

    print("KERNEL_OK")
</pallas_src>

<mosaic_0001>
module attributes {stable_mosaic.version = 11 : i64} {
  func.func @fused_receiver_kernel(%arg0: i32, %arg1: memref<2x8x10xf32, #tpu.memory_space<vmem>>, %arg2: memref<10x32xf32, #tpu.memory_space<vmem>>, %arg3: memref<2x13xf32, #tpu.memory_space<vmem>>, %arg4: memref<32x512xf32, #tpu.memory_space<vmem>>, %arg5: memref<128x512xf32, #tpu.memory_space<vmem>>, %arg6: memref<1x512xf32, #tpu.memory_space<vmem>>, %arg7: memref<128x64xf32, #tpu.memory_space<vmem>>, %arg8: memref<13x64xf32, #tpu.memory_space<vmem>>, %arg9: memref<1x64xf32, #tpu.memory_space<vmem>>, %arg10: memref<64x2xf32, #tpu.memory_space<vmem>>, %arg11: memref<1x2xf32, #tpu.memory_space<vmem>>, %arg12: memref<2x2xf32, #tpu.memory_space<vmem>>, %arg13: memref<2x8x32xf32, #tpu.memory_space<vmem>>) attributes {dimension_semantics = [#tpu.dimension_semantics<arbitrary>], iteration_bounds = array<i64: 1>, scalar_prefetch = 0 : i64, scratch_operands = 0 : i64, tpu.core_type = #tpu.core_type<tc>, window_params = [{pipeline_mode = #tpu.pipeline_mode<synchronous>, transform_indices = @transform_0, window_bounds = array<i64: 2, 8, 10>}, {pipeline_mode = #tpu.pipeline_mode<synchronous>, transform_indices = @transform_1, window_bounds = array<i64: 10, 32>}, {pipeline_mode = #tpu.pipeline_mode<synchronous>, transform_indices = @transform_2, window_bounds = array<i64: 2, 13>}, {pipeline_mode = #tpu.pipeline_mode<synchronous>, transform_indices = @transform_3, window_bounds = array<i64: 32, 512>}, {pipeline_mode = #tpu.pipeline_mode<synchronous>, transform_indices = @transform_4, window_bounds = array<i64: 128, 512>}, {pipeline_mode = #tpu.pipeline_mode<synchronous>, transform_indices = @transform_5, window_bounds = array<i64: 1, 512>}, {pipeline_mode = #tpu.pipeline_mode<synchronous>, transform_indices = @transform_6, window_bounds = array<i64: 128, 64>}, {pipeline_mode = #tpu.pipeline_mode<synchronous>, transform_indices = @transform_7, window_bounds = array<i64: 13, 64>}, {pipeline_mode = #tpu.pipeline_mode<synchronous>, transform_indices = @transform_8, window_bounds = array<i64: 1, 64>}, {pipeline_mode = #tpu.pipeline_mode<synchronous>, transform_indices = @transform_9, window_bounds = array<i64: 64, 2>}, {pipeline_mode = #tpu.pipeline_mode<synchronous>, transform_indices = @transform_10, window_bounds = array<i64: 1, 2>}, {pipeline_mode = #tpu.pipeline_mode<synchronous>, transform_indices = @transform_11, window_bounds = array<i64: 2, 2>}, {pipeline_mode = #tpu.pipeline_mode<synchronous>, transform_indices = @transform_12, window_bounds = array<i64: 2, 8, 32>}]} {
    %c0 = arith.constant 0 : index
    %c0_0 = arith.constant 0 : index
    %c0_1 = arith.constant 0 : index
    %0 = vector.load %arg1[%c0, %c0_0, %c0_1] : memref<2x8x10xf32, #tpu.memory_space<vmem>>, vector<2x8x10xf32>
    %1 = vector.shape_cast %0 : vector<2x8x10xf32> to vector<16x10xf32>
    %c0_2 = arith.constant 0 : index
    %c0_3 = arith.constant 0 : index
    %2 = vector.load %arg2[%c0_2, %c0_3] : memref<10x32xf32, #tpu.memory_space<vmem>>, vector<10x32xf32>
    %cst = arith.constant dense<0.000000e+00> : vector<16x32xf32>
    %3 = tpu.matmul %1, %2, %cst {dimension_numbers = #tpu.dot_dimension_numbers<[1], [0], [0], [1], [0, 0, 1, 1], [], []>} : vector<16x10xf32>, vector<10x32xf32>, vector<16x32xf32> -> vector<16x32xf32>
    %4 = vector.shape_cast %3 : vector<16x32xf32> to vector<2x8x32xf32>
    %c0_4 = arith.constant 0 : index
    %c0_5 = arith.constant 0 : index
    %c0_6 = arith.constant 0 : index
    %5 = vector.load %arg13[%c0_4, %c0_5, %c0_6] : memref<2x8x32xf32, #tpu.memory_space<vmem>>, vector<2x8x32xf32>
    tpu.vector_store %arg13[%c0_4, %c0_5, %c0_6], %4 {strides = array<i32>} : memref<2x8x32xf32, #tpu.memory_space<vmem>>, vector<2x8x32xf32>,
    %c0_7 = arith.constant 0 : index
    %c0_8 = arith.constant 0 : index
    %6 = vector.load %arg6[%c0_7, %c0_8] : memref<1x512xf32, #tpu.memory_space<vmem>>, vector<1x512xf32>
    %7 = vector.shape_cast %6 : vector<1x512xf32> to vector<1x512xf32>
    %8 = vector.broadcast %7 : vector<1x512xf32> to vector<16x512xf32>
    %c0_9 = arith.constant 0 : index
    %c0_10 = arith.constant 0 : index
    %9 = vector.load %arg4[%c0_9, %c0_10] : memref<32x512xf32, #tpu.memory_space<vmem>>, vector<32x512xf32>
    %cst_11 = arith.constant dense<0.000000e+00> : vector<16x512xf32>
    %10 = tpu.matmul %3, %9, %cst_11 {dimension_numbers = #tpu.dot_dimension_numbers<[1], [0], [0], [1], [0, 0, 1, 1], [], []>} : vector<16x32xf32>, vector<32x512xf32>, vector<16x512xf32> -> vector<16x512xf32>
    %11 = arith.addf %10, %8 : vector<16x512xf32>
    %12 = vector.shape_cast %11 : vector<16x512xf32> to vector<2x8x512xf32>
    %c0_12 = arith.constant 0 : index
    %c0_13 = arith.constant 0 : index
    %13 = vector.load %arg5[%c0_12, %c0_13] : memref<128x512xf32, #tpu.memory_space<vmem>>, vector<128x512xf32>
    %14 = arith.truncf %13 : vector<128x512xf32> to vector<128x512xbf16>
    %cst_14 = arith.constant 0.000000e+00 : f32
    %15 = vector.broadcast %cst_14 : f32 to vector<2x128xf32>
    %cst_15 = arith.constant 0.000000e+00 : f32
    %16 = vector.broadcast %cst_15 : f32 to vector<2x128xf32>
    %17 = vector.extract_strided_slice %12 {offsets = [0, 0, 0], sizes = [2, 1, 512], strides = [1, 1, 1]} : vector<2x8x512xf32> to vector<2x1x512xf32>
    %18 = vector.shape_cast %17 : vector<2x1x512xf32> to vector<2x512xf32>
    %19 = arith.truncf %15 : vector<2x128xf32> to vector<2x128xbf16>
    %cst_16 = arith.constant dense<0.000000e+00> : vector<2x512xf32>
    %20 = tpu.matmul %19, %14, %cst_16 {dimension_numbers = #tpu.dot_dimension_numbers<[1], [0], [0], [1], [0, 0, 1, 1], [], []>} : vector<2x128xbf16>, vector<128x512xbf16>, vector<2x512xf32> -> vector<2x512xf32>
    %21 = arith.addf %18, %20 : vector<2x512xf32>
    %22 = vector.extract_strided_slice %21 {offsets = [0, 0], sizes = [2, 384], strides = [1, 1]} : vector<2x512xf32> to vector<2x384xf32>
    %23 = arith.negf %22 : vector<2x384xf32>
    %24 = math.exp %23 : vector<2x384xf32>
    %cst_17 = arith.constant 1.000000e+00 : f32
    %25 = vector.broadcast %cst_17 : f32 to vector<2x384xf32>
    %26 = arith.addf %25, %24 : vector<2x384xf32>
    %27 = arith.divf %25, %26 : vector<2x384xf32>
    %28 = vector.extract_strided_slice %21 {offsets = [0, 384], sizes = [2, 128], strides = [1, 1]} : vector<2x512xf32> to vector<2x128xf32>
    %29 = math.tanh %28 : vector<2x128xf32>
    %30 = vector.extract_strided_slice %27 {offsets = [0, 0], sizes = [2, 128], strides = [1, 1]} : vector<2x384xf32> to vector<2x128xf32>
    %31 = vector.extract_strided_slice %27 {offsets = [0, 128], sizes = [2, 128], strides = [1, 1]} : vector<2x384xf32> to vector<2x128xf32>
    %32 = vector.extract_strided_slice %27 {offsets = [0, 256], sizes = [2, 128], strides = [1, 1]} : vector<2x384xf32> to vector<2x128xf32>
    %33 = arith.mulf %31, %16 : vector<2x128xf32>
    %34 = arith.mulf %30, %29 : vector<2x128xf32>
    %35 = arith.addf %33, %34 : vector<2x128xf32>
    %36 = math.tanh %35 : vector<2x128xf32>
    %37 = arith.mulf %32, %36 : vector<2x128xf32>
    %38 = vector.extract_strided_slice %12 {offsets = [0, 1, 0], sizes = [2, 1, 512], strides = [1, 1, 1]} : vector<2x8x512xf32> to vector<2x1x512xf32>
    %39 = vector.shape_cast %38 : vector<2x1x512xf32> to vector<2x512xf32>
    %40 = arith.truncf %37 : vector<2x128xf32> to vector<2x128xbf16>
    %cst_18 = arith.constant dense<0.000000e+00> : vector<2x512xf32>
    %41 = tpu.matmul %40, %14, %cst_18 {dimension_numbers = #tpu.dot_dimension_numbers<[1], [0], [0], [1], [0, 0, 1, 1], [], []>} : vector<2x128xbf16>, vector<128x512xbf16>, vector<2x512xf32> -> vector<2x512xf32>
    %42 = arith.addf %39, %41 : vector<2x512xf32>
    %43 = vector.extract_strided_slice %42 {offsets = [0, 0], sizes = [2, 384], strides = [1, 1]} : vector<2x512xf32> to vector<2x384xf32>
    %44 = arith.negf %43 : vector<2x384xf32>
    %45 = math.exp %44 : vector<2x384xf32>
    %cst_19 = arith.constant 1.000000e+00 : f32
    %46 = vector.broadcast %cst_19 : f32 to vector<2x384xf32>
    %47 = arith.addf %46, %45 : vector<2x384xf32>
    %48 = arith.divf %46, %47 : vector<2x384xf32>
    %49 = vector.extract_strided_slice %42 {offsets = [0, 384], sizes = [2, 128], strides = [1, 1]} : vector<2x512xf32> to vector<2x128xf32>
    %50 = math.tanh %49 : vector<2x128xf32>
    %51 = vector.extract_strided_slice %48 {offsets = [0, 0], sizes = [2, 128], strides = [1, 1]} : vector<2x384xf32> to vector<2x128xf32>
    %52 = vector.extract_strided_slice %48 {offsets = [0, 128], sizes = [2, 128], strides = [1, 1]} : vector<2x384xf32> to vector<2x128xf32>
    %53 = vector.extract_strided_slice %48 {offsets = [0, 256], sizes = [2, 128], strides = [1, 1]} : vector<2x384xf32> to vector<2x128xf32>
    %54 = arith.mulf %52, %35 : vector<2x128xf32>
    %55 = arith.mulf %51, %50 : vector<2x128xf32>
    %56 = arith.addf %54, %55 : vector<2x128xf32>
    %57 = math.tanh %56 : vector<2x128xf32>
    %58 = arith.mulf %53, %57 : vector<2x128xf32>
    %59 = vector.extract_strided_slice %12 {offsets = [0, 2, 0], sizes = [2, 1, 512], strides = [1, 1, 1]} : vector<2x8x512xf32> to vector<2x1x512xf32>
    %60 = vector.shape_cast %59 : vector<2x1x512xf32> to vector<2x512xf32>
    %61 = arith.truncf %58 : vector<2x128xf32> to vector<2x128xbf16>
    %cst_20 = arith.constant dense<0.000000e+00> : vector<2x512xf32>
    %62 = tpu.matmul %61, %14, %cst_20 {dimension_numbers = #tpu.dot_dimension_numbers<[1], [0], [0], [1], [0, 0, 1, 1], [], []>} : vector<2x128xbf16>, vector<128x512xbf16>, vector<2x512xf32> -> vector<2x512xf32>
    %63 = arith.addf %60, %62 : vector<2x512xf32>
    %64 = vector.extract_strided_slice %63 {offsets = [0, 0], sizes = [2, 384], strides = [1, 1]} : vector<2x512xf32> to vector<2x384xf32>
    %65 = arith.negf %64 : vector<2x384xf32>
    %66 = math.exp %65 : vector<2x384xf32>
    %cst_21 = arith.constant 1.000000e+00 : f32
    %67 = vector.broadcast %cst_21 : f32 to vector<2x384xf32>
    %68 = arith.addf %67, %66 : vector<2x384xf32>
    %69 = arith.divf %67, %68 : vector<2x384xf32>
    %70 = vector.extract_strided_slice %63 {offsets = [0, 384], sizes = [2, 128], strides = [1, 1]} : vector<2x512xf32> to vector<2x128xf32>
    %71 = math.tanh %70 : vector<2x128xf32>
    %72 = vector.extract_strided_slice %69 {offsets = [0, 0], sizes = [2, 128], strides = [1, 1]} : vector<2x384xf32> to vector<2x128xf32>
    %73 = vector.extract_strided_slice %69 {offsets = [0, 128], sizes = [2, 128], strides = [1, 1]} : vector<2x384xf32> to vector<2x128xf32>
    %74 = vector.extract_strided_slice %69 {offsets = [0, 256], sizes = [2, 128], strides = [1, 1]} : vector<2x384xf32> to vector<2x128xf32>
    %75 = arith.mulf %73, %56 : vector<2x128xf32>
    %76 = arith.mulf %72, %71 : vector<2x128xf32>
    %77 = arith.addf %75, %76 : vector<2x128xf32>
    %78 = math.tanh %77 : vector<2x128xf32>
    %79 = arith.mulf %74, %78 : vector<2x128xf32>
    %80 = vector.extract_strided_slice %12 {offsets = [0, 3, 0], sizes = [2, 1, 512], strides = [1, 1, 1]} : vector<2x8x512xf32> to vector<2x1x512xf32>
    %81 = vector.shape_cast %80 : vector<2x1x512xf32> to vector<2x512xf32>
    %82 = arith.truncf %79 : vector<2x128xf32> to vector<2x128xbf16>
    %cst_22 = arith.constant dense<0.000000e+00> : vector<2x512xf32>
    %83 = tpu.matmul %82, %14, %cst_22 {dimension_numbers = #tpu.dot_dimension_numbers<[1], [0], [0], [1], [0, 0, 1, 1], [], []>} : vector<2x128xbf16>, vector<128x512xbf16>, vector<2x512xf32> -> vector<2x512xf32>
    %84 = arith.addf %81, %83 : vector<2x512xf32>
    %85 = vector.extract_strided_slice %84 {offsets = [0, 0], sizes = [2, 384], strides = [1, 1]} : vector<2x512xf32> to vector<2x384xf32>
    %86 = arith.negf %85 : vector<2x384xf32>
    %87 = math.exp %86 : vector<2x384xf32>
    %cst_23 = arith.constant 1.000000e+00 : f32
    %88 = vector.broadcast %cst_23 : f32 to vector<2x384xf32>
    %89 = arith.addf %88, %87 : vector<2x384xf32>
    %90 = arith.divf %88, %89 : vector<2x384xf32>
    %91 = vector.extract_strided_slice %84 {offsets = [0, 384], sizes = [2, 128], strides = [1, 1]} : vector<2x512xf32> to vector<2x128xf32>
    %92 = math.tanh %91 : vector<2x128xf32>
    %93 = vector.extract_strided_slice %90 {offsets = [0, 0], sizes = [2, 128], strides = [1, 1]} : vector<2x384xf32> to vector<2x128xf32>
    %94 = vector.extract_strided_slice %90 {offsets = [0, 128], sizes = [2, 128], strides = [1, 1]} : vector<2x384xf32> to vector<2x128xf32>
    %95 = vector.extract_strided_slice %90 {offsets = [0, 256], sizes = [2, 128], strides = [1, 1]} : vector<2x384xf32> to vector<2x128xf32>
    %96 = arith.mulf %94, %77 : vector<2x128xf32>
    %97 = arith.mulf %93, %92 : vector<2x128xf32>
    %98 = arith.addf %96, %97 : vector<2x128xf32>
    %99 = math.tanh %98 : vector<2x128xf32>
    %100 = arith.mulf %95, %99 : vector<2x128xf32>
    %101 = vector.extract_strided_slice %12 {offsets = [0, 4, 0], sizes = [2, 1, 512], strides = [1, 1, 1]} : vector<2x8x512xf32> to vector<2x1x512xf32>
    %102 = vector.shape_cast %101 : vector<2x1x512xf32> to vector<2x512xf32>
    %103 = arith.truncf %100 : vector<2x128xf32> to vector<2x128xbf16>
    %cst_24 = arith.constant dense<0.000000e+00> : vector<2x512xf32>
    %104 = tpu.matmul %103, %14, %cst_24 {dimension_numbers = #tpu.dot_dimension_numbers<[1], [0], [0], [1], [0, 0, 1, 1], [], []>} : vector<2x128xbf16>, vector<128x512xbf16>, vector<2x512xf32> -> vector<2x512xf32>
    %105 = arith.addf %102, %104 : vector<2x512xf32>
    %106 = vector.extract_strided_slice %105 {offsets = [0, 0], sizes = [2, 384], strides = [1, 1]} : vector<2x512xf32> to vector<2x384xf32>
    %107 = arith.negf %106 : vector<2x384xf32>
    %108 = math.exp %107 : vector<2x384xf32>
    %cst_25 = arith.constant 1.000000e+00 : f32
    %109 = vector.broadcast %cst_25 : f32 to vector<2x384xf32>
    %110 = arith.addf %109, %108 : vector<2x384xf32>
    %111 = arith.divf %109, %110 : vector<2x384xf32>
    %112 = vector.extract_strided_slice %105 {offsets = [0, 384], sizes = [2, 128], strides = [1, 1]} : vector<2x512xf32> to vector<2x128xf32>
    %113 = math.tanh %112 : vector<2x128xf32>
    %114 = vector.extract_strided_slice %111 {offsets = [0, 0], sizes = [2, 128], strides = [1, 1]} : vector<2x384xf32> to vector<2x128xf32>
    %115 = vector.extract_strided_slice %111 {offsets = [0, 128], sizes = [2, 128], strides = [1, 1]} : vector<2x384xf32> to vector<2x128xf32>
    %116 = vector.extract_strided_slice %111 {offsets = [0, 256], sizes = [2, 128], strides = [1, 1]} : vector<2x384xf32> to vector<2x128xf32>
    %117 = arith.mulf %115, %98 : vector<2x128xf32>
    %118 = arith.mulf %114, %113 : vector<2x128xf32>
    %119 = arith.addf %117, %118 : vector<2x128xf32>
    %120 = math.tanh %119 : vector<2x128xf32>
    %121 = arith.mulf %116, %120 : vector<2x128xf32>
    %122 = vector.extract_strided_slice %12 {offsets = [0, 5, 0], sizes = [2, 1, 512], strides = [1, 1, 1]} : vector<2x8x512xf32> to vector<2x1x512xf32>
    %123 = vector.shape_cast %122 : vector<2x1x512xf32> to vector<2x512xf32>
    %124 = arith.truncf %121 : vector<2x128xf32> to vector<2x128xbf16>
    %cst_26 = arith.constant dense<0.000000e+00> : vector<2x512xf32>
    %125 = tpu.matmul %124, %14, %cst_26 {dimension_numbers = #tpu.dot_dimension_numbers<[1], [0], [0], [1], [0, 0, 1, 1], [], []>} : vector<2x128xbf16>, vector<128x512xbf16>, vector<2x512xf32> -> vector<2x512xf32>
    %126 = arith.addf %123, %125 : vector<2x512xf32>
    %127 = vector.extract_strided_slice %126 {offsets = [0, 0], sizes = [2, 384], strides = [1, 1]} : vector<2x512xf32> to vector<2x384xf32>
    %128 = arith.negf %127 : vector<2x384xf32>
    %129 = math.exp %128 : vector<2x384xf32>
    %cst_27 = arith.constant 1.000000e+00 : f32
    %130 = vector.broadcast %cst_27 : f32 to vector<2x384xf32>
    %131 = arith.addf %130, %129 : vector<2x384xf32>
    %132 = arith.divf %130, %131 : vector<2x384xf32>
    %133 = vector.extract_strided_slice %126 {offsets = [0, 384], sizes = [2, 128], strides = [1, 1]} : vector<2x512xf32> to vector<2x128xf32>
    %134 = math.tanh %133 : vector<2x128xf32>
    %135 = vector.extract_strided_slice %132 {offsets = [0, 0], sizes = [2, 128], strides = [1, 1]} : vector<2x384xf32> to vector<2x128xf32>
    %136 = vector.extract_strided_slice %132 {offsets = [0, 128], sizes = [2, 128], strides = [1, 1]} : vector<2x384xf32> to vector<2x128xf32>
    %137 = vector.extract_strided_slice %132 {offsets = [0, 256], sizes = [2, 128], strides = [1, 1]} : vector<2x384xf32> to vector<2x128xf32>
    %138 = arith.mulf %136, %119 : vector<2x128xf32>
    %139 = arith.mulf %135, %134 : vector<2x128xf32>
    %140 = arith.addf %138, %139 : vector<2x128xf32>
    %141 = math.tanh %140 : vector<2x128xf32>
    %142 = arith.mulf %137, %141 : vector<2x128xf32>
    %143 = vector.extract_strided_slice %12 {offsets = [0, 6, 0], sizes = [2, 1, 512], strides = [1, 1, 1]} : vector<2x8x512xf32> to vector<2x1x512xf32>
    %144 = vector.shape_cast %143 : vector<2x1x512xf32> to vector<2x512xf32>
    %145 = arith.truncf %142 : vector<2x128xf32> to vector<2x128xbf16>
    %cst_28 = arith.constant dense<0.000000e+00> : vector<2x512xf32>
    %146 = tpu.matmul %145, %14, %cst_28 {dimension_numbers = #tpu.dot_dimension_numbers<[1], [0], [0], [1], [0, 0, 1, 1], [], []>} : vector<2x128xbf16>, vector<128x512xbf16>, vector<2x512xf32> -> vector<2x512xf32>
    %147 = arith.addf %144, %146 : vector<2x512xf32>
    %148 = vector.extract_strided_slice %147 {offsets = [0, 0], sizes = [2, 384], strides = [1, 1]} : vector<2x512xf32> to vector<2x384xf32>
    %149 = arith.negf %148 : vector<2x384xf32>
    %150 = math.exp %149 : vector<2x384xf32>
    %cst_29 = arith.constant 1.000000e+00 : f32
    %151 = vector.broadcast %cst_29 : f32 to vector<2x384xf32>
    %152 = arith.addf %151, %150 : vector<2x384xf32>
    %153 = arith.divf %151, %152 : vector<2x384xf32>
    %154 = vector.extract_strided_slice %147 {offsets = [0, 384], sizes = [2, 128], strides = [1, 1]} : vector<2x512xf32> to vector<2x128xf32>
    %155 = math.tanh %154 : vector<2x128xf32>
    %156 = vector.extract_strided_slice %153 {offsets = [0, 0], sizes = [2, 128], strides = [1, 1]} : vector<2x384xf32> to vector<2x128xf32>
    %157 = vector.extract_strided_slice %153 {offsets = [0, 128], sizes = [2, 128], strides = [1, 1]} : vector<2x384xf32> to vector<2x128xf32>
    %158 = vector.extract_strided_slice %153 {offsets = [0, 256], sizes = [2, 128], strides = [1, 1]} : vector<2x384xf32> to vector<2x128xf32>
    %159 = arith.mulf %157, %140 : vector<2x128xf32>
    %160 = arith.mulf %156, %155 : vector<2x128xf32>
    %161 = arith.addf %159, %160 : vector<2x128xf32>
    %162 = math.tanh %161 : vector<2x128xf32>
    %163 = arith.mulf %158, %162 : vector<2x128xf32>
    %164 = vector.extract_strided_slice %12 {offsets = [0, 7, 0], sizes = [2, 1, 512], strides = [1, 1, 1]} : vector<2x8x512xf32> to vector<2x1x512xf32>
    %165 = vector.shape_cast %164 : vector<2x1x512xf32> to vector<2x512xf32>
    %166 = arith.truncf %163 : vector<2x128xf32> to vector<2x128xbf16>
    %cst_30 = arith.constant dense<0.000000e+00> : vector<2x512xf32>
    %167 = tpu.matmul %166, %14, %cst_30 {dimension_numbers = #tpu.dot_dimension_numbers<[1], [0], [0], [1], [0, 0, 1, 1], [], []>} : vector<2x128xbf16>, vector<128x512xbf16>, vector<2x512xf32> -> vector<2x512xf32>
    %168 = arith.addf %165, %167 : vector<2x512xf32>
    %169 = vector.extract_strided_slice %168 {offsets = [0, 0], sizes = [2, 384], strides = [1, 1]} : vector<2x512xf32> to vector<2x384xf32>
    %170 = arith.negf %169 : vector<2x384xf32>
    %171 = math.exp %170 : vector<2x384xf32>
    %cst_31 = arith.constant 1.000000e+00 : f32
    %172 = vector.broadcast %cst_31 : f32 to vector<2x384xf32>
    %173 = arith.addf %172, %171 : vector<2x384xf32>
    %174 = arith.divf %172, %173 : vector<2x384xf32>
    %175 = vector.extract_strided_slice %168 {offsets = [0, 384], sizes = [2, 128], strides = [1, 1]} : vector<2x512xf32> to vector<2x128xf32>
    %176 = math.tanh %175 : vector<2x128xf32>
    %177 = vector.extract_strided_slice %174 {offsets = [0, 0], sizes = [2, 128], strides = [1, 1]} : vector<2x384xf32> to vector<2x128xf32>
    %178 = vector.extract_strided_slice %174 {offsets = [0, 128], sizes = [2, 128], strides = [1, 1]} : vector<2x384xf32> to vector<2x128xf32>
    %179 = vector.extract_strided_slice %174 {offsets = [0, 256], sizes = [2, 128], strides = [1, 1]} : vector<2x384xf32> to vector<2x128xf32>
    %180 = arith.mulf %178, %161 : vector<2x128xf32>
    %181 = arith.mulf %177, %176 : vector<2x128xf32>
    %182 = arith.addf %180, %181 : vector<2x128xf32>
    %183 = math.tanh %182 : vector<2x128xf32>
    %184 = arith.mulf %179, %183 : vector<2x128xf32>
    %c0_32 = arith.constant 0 : index
    %c0_33 = arith.constant 0 : index
    %185 = vector.load %arg7[%c0_32, %c0_33] : memref<128x64xf32, #tpu.memory_space<vmem>>, vector<128x64xf32>
    %cst_34 = arith.constant dense<0.000000e+00> : vector<2x64xf32>
    %186 = tpu.matmul %184, %185, %cst_34 {dimension_numbers = #tpu.dot_dimension_numbers<[1], [0], [0], [1], [0, 0, 1, 1], [], []>} : vector<2x128xf32>, vector<128x64xf32>, vector<2x64xf32> -> vector<2x64xf32>
    %c0_35 = arith.constant 0 : index
    %c0_36 = arith.constant 0 : index
    %187 = vector.load %arg3[%c0_35, %c0_36] : memref<2x13xf32, #tpu.memory_space<vmem>>, vector<2x13xf32>
    %c0_37 = arith.constant 0 : index
    %c0_38 = arith.constant 0 : index
    %188 = vector.load %arg8[%c0_37, %c0_38] : memref<13x64xf32, #tpu.memory_space<vmem>>, vector<13x64xf32>
    %cst_39 = arith.constant dense<0.000000e+00> : vector<2x64xf32>
    %189 = tpu.matmul %187, %188, %cst_39 {dimension_numbers = #tpu.dot_dimension_numbers<[1], [0], [0], [1], [0, 0, 1, 1], [], []>} : vector<2x13xf32>, vector<13x64xf32>, vector<2x64xf32> -> vector<2x64xf32>
    %190 = arith.addf %186, %189 : vector<2x64xf32>
    %c0_40 = arith.constant 0 : index
    %c0_41 = arith.constant 0 : index
    %191 = vector.load %arg9[%c0_40, %c0_41] : memref<1x64xf32, #tpu.memory_space<vmem>>, vector<1x64xf32>
    %192 = vector.broadcast %191 : vector<1x64xf32> to vector<2x64xf32>
    %193 = arith.addf %190, %192 : vector<2x64xf32>
    %cst_42 = arith.constant 0.000000e+00 : f32
    %194 = vector.broadcast %cst_42 : f32 to vector<2x64xf32>
    %195 = arith.maximumf %193, %194 : vector<2x64xf32>
    %c0_43 = arith.constant 0 : index
    %c0_44 = arith.constant 0 : index
    %196 = vector.load %arg10[%c0_43, %c0_44] : memref<64x2xf32, #tpu.memory_space<vmem>>, vector<64x2xf32>
    %cst_45 = arith.constant dense<0.000000e+00> : vector<2x2xf32>
    %197 = tpu.matmul %195, %196, %cst_45 {dimension_numbers = #tpu.dot_dimension_numbers<[1], [0], [0], [1], [0, 0, 1, 1], [], []>} : vector<2x64xf32>, vector<64x2xf32>, vector<2x2xf32> -> vector<2x2xf32>
    %c0_46 = arith.constant 0 : index
    %c0_47 = arith.constant 0 : index
    %198 = vector.load %arg11[%c0_46, %c0_47] : memref<1x2xf32, #tpu.memory_space<vmem>>, vector<1x2xf32>
    %199 = vector.broadcast %198 : vector<1x2xf32> to vector<2x2xf32>
    %200 = arith.addf %197, %199 : vector<2x2xf32>
    %c0_48 = arith.constant 0 : index
    %c0_49 = arith.constant 0 : index
    %201 = vector.load %arg12[%c0_48, %c0_49] : memref<2x2xf32, #tpu.memory_space<vmem>>, vector<2x2xf32>
    tpu.vector_store %arg12[%c0_48, %c0_49], %200 {strides = array<i32>} : memref<2x2xf32, #tpu.memory_space<vmem>>, vector<2x2xf32>,
    return
  }
  func.func @transform_0(%arg0: i32) -> (i32, i32, i32) {
    %c0_i32 = arith.constant 0 : i32
    %c0_i32_0 = arith.constant 0 : i32
    %c0_i32_1 = arith.constant 0 : i32
    %c0_i32_2 = arith.constant 0 : i32
    return %c0_i32, %c0_i32_0, %c0_i32_1 : i32, i32, i32
  }
  func.func @transform_1(%arg0: i32) -> (i32, i32) {
    %c0_i32 = arith.constant 0 : i32
    %c0_i32_0 = arith.constant 0 : i32
    %c0_i32_1 = arith.constant 0 : i32
    return %c0_i32, %c0_i32_0 : i32, i32
  }
  func.func @transform_2(%arg0: i32) -> (i32, i32) {
    %c0_i32 = arith.constant 0 : i32
    %c0_i32_0 = arith.constant 0 : i32
    %c0_i32_1 = arith.constant 0 : i32
    return %c0_i32, %c0_i32_0 : i32, i32
  }
  func.func @transform_3(%arg0: i32) -> (i32, i32) {
    %c0_i32 = arith.constant 0 : i32
    %c0_i32_0 = arith.constant 0 : i32
    %c0_i32_1 = arith.constant 0 : i32
    return %c0_i32, %c0_i32_0 : i32, i32
  }
  func.func @transform_4(%arg0: i32) -> (i32, i32) {
    %c0_i32 = arith.constant 0 : i32
    %c0_i32_0 = arith.constant 0 : i32
    %c0_i32_1 = arith.constant 0 : i32
    return %c0_i32, %c0_i32_0 : i32, i32
  }
  func.func @transform_5(%arg0: i32) -> (i32, i32) {
    %c0_i32 = arith.constant 0 : i32
    %c0_i32_0 = arith.constant 0 : i32
    %c0_i32_1 = arith.constant 0 : i32
    return %c0_i32, %c0_i32_0 : i32, i32
  }
  func.func @transform_6(%arg0: i32) -> (i32, i32) {
    %c0_i32 = arith.constant 0 : i32
    %c0_i32_0 = arith.constant 0 : i32
    %c0_i32_1 = arith.constant 0 : i32
    return %c0_i32, %c0_i32_0 : i32, i32
  }
  func.func @transform_7(%arg0: i32) -> (i32, i32) {
    %c0_i32 = arith.constant 0 : i32
    %c0_i32_0 = arith.constant 0 : i32
    %c0_i32_1 = arith.constant 0 : i32
    return %c0_i32, %c0_i32_0 : i32, i32
  }
  func.func @transform_8(%arg0: i32) -> (i32, i32) {
    %c0_i32 = arith.constant 0 : i32
    %c0_i32_0 = arith.constant 0 : i32
    %c0_i32_1 = arith.constant 0 : i32
    return %c0_i32, %c0_i32_0 : i32, i32
  }
  func.func @transform_9(%arg0: i32) -> (i32, i32) {
    %c0_i32 = arith.constant 0 : i32
    %c0_i32_0 = arith.constant 0 : i32
    %c0_i32_1 = arith.constant 0 : i32
    return %c0_i32, %c0_i32_0 : i32, i32
  }
  func.func @transform_10(%arg0: i32) -> (i32, i32) {
    %c0_i32 = arith.constant 0 : i32
    %c0_i32_0 = arith.constant 0 : i32
    %c0_i32_1 = arith.constant 0 : i32
    return %c0_i32, %c0_i32_0 : i32, i32
  }
  func.func @transform_11(%arg0: i32) -> (i32, i32) {
    %c0_i32 = arith.constant 0 : i32
    %c0_i32_0 = arith.constant 0 : i32
    %c0_i32_1 = arith.constant 0 : i32
    return %c0_i32, %c0_i32_0 : i32, i32
  }
  func.func @transform_12(%arg0: i32) -> (i32, i32, i32) {
    %c0_i32 = arith.constant 0 : i32
    %c0_i32_0 = arith.constant 0 : i32
    %c0_i32_1 = arith.constant 0 : i32
    %c0_i32_2 = arith.constant 0 : i32
    return %c0_i32, %c0_i32_0, %c0_i32_1 : i32, i32, i32
  }
}

</mosaic_0001>

<bundles_post_ra>
// kernel: obverter_receiver_forward.1
= control target key start
LH: loop header
LB: loop body
LE: loop exit
PB: predicated region body
PF: predicated region fallthrough
CT: control target
= control target key end

     0   :  { %18 = vsyncpa [#allocation3], 0  ;;  %s3477_s0 = inlined_call_operand.vmem [shape: f32[2,8,10], index: 0, kind: input, shape index: {}]   ;;  %s3478_s1 = inlined_call_operand.vmem [shape: f32[10,32], index: 1, kind: input, shape index: {}]   ;;  %s3479_s2 = inlined_call_operand.vmem [shape: f32[2,13], index: 2, kind: input, shape index: {}]   ;;  %s3480_s3 = inlined_call_operand.vmem [shape: f32[32,512], index: 3, kind: input, shape index: {}]   ;;  %s3481_s4 = inlined_call_operand.hbm [shape: f32[128,512], index: 4, kind: input, shape index: {}]   ;;  %s3482_s5 = inlined_call_operand.vmem [shape: f32[1,512], index: 5, kind: input, shape index: {}]   ;;  %s3483_s6 = inlined_call_operand.vmem [shape: f32[128,64], index: 6, kind: input, shape index: {}]   ;;  %s3484_s7 = inlined_call_operand.vmem [shape: f32[13,64], index: 7, kind: input, shape index: {}]   ;;  %s3485_s8 = inlined_call_operand.vmem [shape: f32[1,64], index: 8, kind: input, shape index: {}]   ;;  %s3486_s9 = inlined_call_operand.vmem [shape: f32[64,2], index: 9, kind: input, shape index: {}]   ;;  %s3487_s10 = inlined_call_operand.vmem [shape: f32[1,2], index: 10, kind: input, shape index: {}]   ;;  %s3488_s11 = inlined_call_operand.hbm [shape: f32[2,2], index: 11, kind: output, shape index: {0}]   ;;  %s3489_s12 = inlined_call_operand.hbm [shape: f32[2,8,32], index: 12, kind: output, shape index: {1}]  }
   0x1   :  { %19 = vsyncpa [#allocation4], 0 }
   0x2   :  { %20 = vsyncpa [#allocation7], 0  ;;  %s2685_s21 = smov [#allocation2]   ;;  %s2613_s25 = scalar_lea.hbm %s3481_s4, 8192 }
   0x3   :  { %s34_s22 = sshll.u32 %s2685_s21, 4  ;;  %p2614_p0 = scmp.ne.s32.totalorder %s3481_s4, %s2613_s25  ;;  %s35_s22 = int_to_ptr.vmem [resolvable:$true] %s34_s22 }
   0x4   :  { %p2617_p1 = scmp.lt.u32.totalorder %s2613_s25, %s3481_s4 }
   0x6   :  { %p2619_p2 = pnand %p2617_p1, %p2614_p0 }
   0x8   :  { %2622 = shalt.err (!%p2619_p2)
}
   0x9   :  { %s2623_s30 = scalar_lea.vmem %s35_s22, 8192  ;;  %p2628_p4 = scmp.lt.s32.totalorder %s35_s22, %s35_s22 }
   0xa   :  { %p2624_p3 = scmp.ne.s32.totalorder %s35_s22, %s2623_s30  ;;  %p2629_p5 = scmp.lt.s32.totalorder %s2623_s30, %s2623_s30 }
   0xc   :  { %p2630_p6 = por %p2629_p5, %p2628_p4 }
   0xe   :  { %p2631_p7 = pnand %p2630_p6, %p2624_p3 }
  0x10   :  { %2634 = shalt.err (!%p2631_p7)
}
  0x11   :  { %s2686_s13 = smov 512   ;;  %s2687_s14 = smov 32  }
  0x12   :  { %40 = dma.hbm_to_vmem [thread:$0]  %s3481_s4, 8192, %s35_s22, [#allocation3], %s2686_s13, %s2686_s13, %s2687_s14  }
  0x13   :  { %2679 = dma.done.wait [#allocation3], 8192  }
  0x14   :  { %2680 = vsyncadd [#allocation3], 4294959104  ;;  %vm68_vm0 = vcmask 1041408   ;;  %vm61_vm1 = vcmask 80896   ;;  %vm2688_vm2 = vmmov 1   ;;  %v59_v1 = vld [vmem:[%s3478_s1] sm:$0xff] }
  0x15   :  { %vm2775_vm3 = vmpackc.low %vm68_vm0, %vm2688_vm2  ;;  %v60_v2 = vld [vmem:[%s3478_s1 + $0x8] sm:$0x3]  ;;  %v57_v3 = vld [vmem:[%s3477_s0] sm:$0xff]  ;;  %v3490_v36 = vmov 0.0   ;;  %vm147_vm4 = vcmask 261120   ;;  %vm605_vm5 = vcmask 1041409  }
  0x16   :  { %v2283_v4 = vpack.c.bf16 %v60_v2, %v59_v1  ;;  %2219 = vmatprep.mubr.msk.f32.mxu1 %vm61_vm1, %v57_v3  ;;  %v173_v5 = vld [vmem:[%s3480_s3 + $0x8] sm:$0xff]  ;;  %v175_v9 = vld [vmem:[%s3480_s3 + $0x18] sm:$0xff]  ;;  %v172_v11 = vld [vmem:[%s3480_s3] sm:$0xff]  ;;  %335 = vmatprep.mubr.f32.mxu0 %v3490_v36  ;;  %vm1841_vm6 = vcmask 1044480   ;;  %vm2692_vm8 = vmmov 0   ;;  %vm1837_vm9 = vcmask 105472  }
  0x17   :  { %v177_v6 = vld [vmem:[%s3480_s3 + $0x28] sm:$0xff]  ;;  %v179_v10 = vld [vmem:[%s3480_s3 + $0x38] sm:$0xff]  ;;  %v176_v13 = vld [vmem:[%s3480_s3 + $0x20] sm:$0xff]  ;;  %vm2015_vm10 = vcmask 523264  }
  0x18   :  { %v58_v7 = vld [vmem:[%s3477_s0 + $0x8] sm:$0xff]  ;;  %v2289_v8 = vpack.c.bf16 %v177_v6, %v173_v5  ;;  %2285 = vmatprep.subr.msk.bf16.mxu1 %vm2775_vm3, %v2283_v4  ;;  %v2297_v12 = vpack.c.bf16 %v179_v10, %v175_v9  ;;  %v174_v14 = vld [vmem:[%s3480_s3 + $0x10] sm:$0xff]  ;;  %v2291_v16 = vpack.c.bf16 %v176_v13, %v172_v11  ;;  %v183_v20 = vld [vmem:[%s3480_s3 + $0x58] sm:$0xff] }
  0x19   :  { %v178_v15 = vld [vmem:[%s3480_s3 + $0x30] sm:$0xff]  ;;  %2288 = vmatpush3.bf16.msk.msra.mxu1 %vm2775_vm3, %v2283_v4  ;;  %v181_v18 = vld [vmem:[%s3480_s3 + $0x48] sm:$0xff]  ;;  %v187_v22 = vld [vmem:[%s3480_s3 + $0x78] sm:$0xff] }
  0x1a   :  { %v2299_v17 = vpack.c.bf16 %v178_v15, %v174_v14  ;;  %v185_v19 = vld [vmem:[%s3480_s3 + $0x68] sm:$0xff]  ;;  %2290 = vmatprep.subr.bf16.mxu1 %v2289_v8  ;;  %2298 = vmatprep.subr.bf16.mxu0 %v2297_v12  ;;  %v180_v23 = vld [vmem:[%s3480_s3 + $0x40] sm:$0xff]  ;;  %v2301_v25 = vpack.c.bf16 %v187_v22, %v183_v20  ;;  %v182_v26 = vld [vmem:[%s3480_s3 + $0x50] sm:$0xff] }
  0x1b   :  { %v2293_v21 = vpack.c.bf16 %v185_v19, %v181_v18  ;;  %v184_v24 = vld [vmem:[%s3480_s3 + $0x60] sm:$0xff]  ;;  %v186_v27 = vld [vmem:[%s3480_s3 + $0x70] sm:$0xff]  ;;  %v349_v30 = vld [vmem:[#allocation2 + $0x8] sm:$0xff]  ;;  %v3492_v19 = vmov 0  }
  0x1c   :  { %2300 = vmatpush1.bf16.msra.mxu0 %v2299_v17  ;;  %2220 = vmatmul.mubr.msk.f32.vlgmr.msra.gmra.mrb[0].mxu1 %vm61_vm1, %v58_v7  ;;  %v2303_v28 = vpack.c.bf16 %v186_v27, %v182_v26  ;;  %v2295_v29 = vpack.c.bf16 %v184_v24, %v180_v23  ;;  %v353_v31 = vld [vmem:[#allocation2 + $0x28] sm:$0xff]  ;;  %v351_v32 = vld [vmem:[#allocation2 + $0x18] sm:$0xff]  ;;  %v348_v37 = vld [vmem:[#allocation2] sm:$0xff] }
  0x1d   :  { %2292 = vmatpush1.bf16.msra.mxu1 %v2291_v16  ;;  %2302 = vmatprep.subr.bf16.mxu0 %v2301_v25  ;;  %v2845_v33 = vpack.c.bf16 %v353_v31, %v349_v30  ;;  %v355_v34 = vld [vmem:[#allocation2 + $0x38] sm:$0xff]  ;;  %v352_v38 = vld [vmem:[#allocation2 + $0x20] sm:$0xff]  ;;  %v350_v39 = vld [vmem:[#allocation2 + $0x10] sm:$0xff] }
  0x1e   :  { %2294 = vmatprep.subr.bf16.mxu1 %v2293_v21  ;;  %v2847_v35 = vpack.c.bf16 %v355_v34, %v351_v32  ;;  %258 = vmatprep.mubr.f32.mxu1 %v3490_v36  ;;  %v354_v40 = vld [vmem:[#allocation2 + $0x30] sm:$0xff]  ;;  %v357_v41 = vld [vmem:[#allocation2 + $0x48] sm:$0xff]  ;;  %v359_v43 = vld [vmem:[#allocation2 + $0x58] sm:$0xff]  ;;  %v2853_v45 = vpack.c.bf16 %v352_v38, %v348_v37 }
  0x1f   :  { %v361_v42 = vld [vmem:[#allocation2 + $0x68] sm:$0xff]  ;;  %v363_v44 = vld [vmem:[#allocation2 + $0x78] sm:$0xff]  ;;  %v2855_v46 = vpack.c.bf16 %v354_v40, %v350_v39  ;;  %v356_v47 = vld [vmem:[#allocation2 + $0x40] sm:$0xff] }
  0x20   :  { %2304 = vmatpush1.bf16.msra.mxu0 %v2303_v28  ;;  %v360_v48 = vld [vmem:[#allocation2 + $0x60] sm:$0xff]  ;;  %v358_v50 = vld [vmem:[#allocation2 + $0x50] sm:$0xff]  ;;  %v365_v52 = vld [vmem:[#allocation2 + $0x88] sm:$0xff]  ;;  %v2858_v54 = vpack.c.bf16 %v361_v42, %v357_v41  ;;  %v2860_v55 = vpack.c.bf16 %v363_v44, %v359_v43 }
  0x21   :  { %2296 = vmatpush1.bf16.msra.mxu1 %v2295_v29  ;;  %485 = vmatprep.subr.bf16.mxu0 %v2847_v35  ;;  %v362_v51 = vld [vmem:[#allocation2 + $0x70] sm:$0xff]  ;;  %v369_v56 = vld [vmem:[#allocation2 + $0xa8] sm:$0xff]  ;;  %v367_v57 = vld [vmem:[#allocation2 + $0x98] sm:$0xff]  ;;  %v2867_v59 = vpack.c.bf16 %v360_v48, %v356_v47 }
  0x22   :  { %444 = vmatprep.subr.bf16.mxu1 %v2845_v33  ;;  %v371_v58 = vld [vmem:[#allocation2 + $0xb8] sm:$0xff]  ;;  %v2869_v60 = vpack.c.bf16 %v362_v51, %v358_v50  ;;  %v364_v61 = vld [vmem:[#allocation2 + $0x80] sm:$0xff]  ;;  %v2873_v63 = vpack.c.bf16 %v369_v56, %v365_v52  ;;  %v366_v1 = vld [vmem:[#allocation2 + $0x90] sm:$0xff] }
  0x23   :  { %v368_v62 = vld [vmem:[#allocation2 + $0xa0] sm:$0xff]  ;;  %v2875_v0 = vpack.c.bf16 %v371_v58, %v367_v57  ;;  %v370_v2 = vld [vmem:[#allocation2 + $0xb0] sm:$0xff]  ;;  %v373_v3 = vld [vmem:[#allocation2 + $0xc8] sm:$0xff] }
  0x24   :  { %v377_v4 = vld [vmem:[#allocation2 + $0xe8] sm:$0xff]  ;;  %v375_v5 = vld [vmem:[#allocation2 + $0xd8] sm:$0xff]  ;;  %v2883_v7 = vpack.c.bf16 %v368_v62, %v364_v61  ;;  %v2885_v8 = vpack.c.bf16 %v370_v2, %v366_v1  ;;  %v372_v9 = vld [vmem:[#allocation2 + $0xc0] sm:$0xff] }
  0x25   :  { %v379_v6 = vld [vmem:[#allocation2 + $0xf8] sm:$0xff]  ;;  %v376_v10 = vld [vmem:[#allocation2 + $0xe0] sm:$0xff]  ;;  %v2889_v11 = vpack.c.bf16 %v377_v4, %v373_v3  ;;  %v374_v13 = vld [vmem:[#allocation2 + $0xd0] sm:$0xff] }
  0x26   :  { %v2891_v12 = vpack.c.bf16 %v379_v6, %v375_v5  ;;  %v378_v14 = vld [vmem:[#allocation2 + $0xf0] sm:$0xff]  ;;  %v381_v15 = vld [vmem:[#allocation2 + $0x108] sm:$0xff]  ;;  %v383_v17 = vld [vmem:[#allocation2 + $0x118] sm:$0xff]  ;;  %v2897_v20 = vpack.c.bf16 %v376_v10, %v372_v9 }
  0x27   :  { %v385_v16 = vld [vmem:[#allocation2 + $0x128] sm:$0xff]  ;;  %v387_v18 = vld [vmem:[#allocation2 + $0x138] sm:$0xff]  ;;  %v2899_v21 = vpack.c.bf16 %v378_v14, %v374_v13  ;;  %v380_v22 = vld [vmem:[#allocation2 + $0x100] sm:$0xff] }
  0x28   :  { %v384_v23 = vld [vmem:[#allocation2 + $0x120] sm:$0xff]  ;;  %v2903_v24 = vpack.c.bf16 %v385_v16, %v381_v15  ;;  %v2905_v25 = vpack.c.bf16 %v387_v18, %v383_v17  ;;  %v382_v26 = vld [vmem:[#allocation2 + $0x110] sm:$0xff]  ;;  %v389_v28 = vld [vmem:[#allocation2 + $0x148] sm:$0xff] }
  0x29   :  { %v386_v27 = vld [vmem:[#allocation2 + $0x130] sm:$0xff]  ;;  %v393_v29 = vld [vmem:[#allocation2 + $0x168] sm:$0xff]  ;;  %v391_v30 = vld [vmem:[#allocation2 + $0x158] sm:$0xff]  ;;  %v2909_v32 = vpack.c.bf16 %v384_v23, %v380_v22 }
  0x2a   :  { %v395_v31 = vld [vmem:[#allocation2 + $0x178] sm:$0xff]  ;;  %v2911_v34 = vpack.c.bf16 %v386_v27, %v382_v26  ;;  %v388_v37 = vld [vmem:[#allocation2 + $0x140] sm:$0xff]  ;;  %v2915_v39 = vpack.c.bf16 %v393_v29, %v389_v28  ;;  %v390_v41 = vld [vmem:[#allocation2 + $0x150] sm:$0xff] }
  0x2b   :  { %v392_v38 = vld [vmem:[#allocation2 + $0x160] sm:$0xff]  ;;  %v2917_v40 = vpack.c.bf16 %v395_v31, %v391_v30  ;;  %v394_v42 = vld [vmem:[#allocation2 + $0x170] sm:$0xff]  ;;  %v397_v43 = vld [vmem:[#allocation2 + $0x188] sm:$0xff]  ;;  %v152_v30 = vlaneseq }
  0x2c   :  { %v401_v44 = vld [vmem:[#allocation2 + $0x1a8] sm:$0xff]  ;;  %v399_v47 = vld [vmem:[#allocation2 + $0x198] sm:$0xff]  ;;  %v2923_v50 = vpack.c.bf16 %v394_v42, %v390_v41  ;;  %v396_v51 = vld [vmem:[#allocation2 + $0x180] sm:$0xff] }
  0x2d   :  { %v403_v48 = vld [vmem:[#allocation2 + $0x1b8] sm:$0xff]  ;;  %v400_v52 = vld [vmem:[#allocation2 + $0x1a0] sm:$0xff]  ;;  %v398_v57 = vld [vmem:[#allocation2 + $0x190] sm:$0xff]  ;;  %v153_v31 = vshrl.u32 %v152_v30, 7 }
  0x2e   :  { %v2929_v56 = vpack.c.bf16 %v403_v48, %v399_v47  ;;  %v402_v58 = vld [vmem:[#allocation2 + $0x1b0] sm:$0xff]  ;;  %v405_v61 = vld [vmem:[#allocation2 + $0x1c8] sm:$0xff]  ;;  %v407_v1 = vld [vmem:[#allocation2 + $0x1d8] sm:$0xff]  ;;  %v2933_v3 = vpack.c.bf16 %v400_v52, %v396_v51 }
  0x2f   :  { %v409_v62 = vld [vmem:[#allocation2 + $0x1e8] sm:$0xff]  ;;  %v411_v2 = vld [vmem:[#allocation2 + $0x1f8] sm:$0xff]  ;;  %v2935_v4 = vpack.c.bf16 %v402_v58, %v398_v57  ;;  %v404_v5 = vld [vmem:[#allocation2 + $0x1c0] sm:$0xff]  ;;  %v158_v41 = vsub.s32 1, %v153_v31  ;;  %v166_v51 = vsub.s32 3, %v153_v31 }
  0x30   :  { %v2939_v6 = vpack.c.bf16 %v409_v62, %v405_v61  ;;  %v2941_v9 = vpack.c.bf16 %v411_v2, %v407_v1  ;;  %v408_v10 = vld [vmem:[#allocation2 + $0x1e0] sm:$0xff]  ;;  %v406_v13 = vld [vmem:[#allocation2 + $0x1d0] sm:$0xff]  ;;  %vm3359_vm7 = vmpackc.low %vm1841_vm6, %vm2688_vm2 }
  0x31   :  { %v410_v14 = vld [vmem:[#allocation2 + $0x1f0] sm:$0xff]  ;;  %v2945_v15 = vpack.c.bf16 %v408_v10, %v404_v5 }
  0x32   :  { %v2947_v16 = vpack.c.bf16 %v410_v14, %v406_v13 }
  0xef   :  { %v2221_v49 = vpop.f32.mrb[0].mxu1 }
  0xf0   :  { %149 = vst.msk [vmem:[#allocation6 + $0x8] sm:$0xff] %vm147_vm4, %v2221_v49  ;;  %v138_v53 = vpop.f32.mrb[1].mxu1 }
  0xf1   :  { %148 = vst.msk [vmem:[#allocation6] sm:$0xff] %vm147_vm4, %v138_v53  ;;  %2125 = vmatmul.mubr.msk.f32.vlgmr.msra.gmra.mrb[2].mxu1 %vm147_vm4, %v138_v53  ;;  %2127 = vmatmul.mubr.msk.f32.vlgmr.msra.gmra.mrb[0].mxu0 %vm147_vm4, %v138_v53  ;;  %v2927_v53 = vpack.c.bf16 %v401_v44, %v397_v43  ;;  %v162_v44 = vsub.s32 2, %v153_v31 }
  0xf2   :  { %445 = vmatpush1.bf16.msra.mxu1 %v2853_v45  ;;  %486 = vmatpush1.bf16.msra.mxu0 %v2855_v46 }
  0xf3   :  { %264 = vmatprep.mubr.f32.mxu1 %v3490_v36  ;;  %341 = vmatprep.mubr.f32.mxu0 %v3490_v36 }
  0xf4   :  { %446 = vmatprep.subr.bf16.mxu1 %v2858_v54  ;;  %487 = vmatprep.subr.bf16.mxu0 %v2860_v55 }
  0xf5   :  { %2126 = vmatmul.mubr.msk.f32.gmra.mrb[4].mxu1 %vm147_vm4, %v2221_v49  ;;  %2128 = vmatmul.mubr.msk.f32.gmra.mrb[2].mxu0 %vm147_vm4, %v2221_v49  ;;  %v2921_v49 = vpack.c.bf16 %v392_v38, %v388_v37  ;;  %v154_v37 = vsub.s32 0, %v153_v31  ;;  %v150_v38 = vld [vmem:[%s3482_s5] sm:$0xf] }
  0xf6   :  { %447 = vmatpush1.bf16.msra.mxu1 %v2867_v59  ;;  %488 = vmatpush1.bf16.msra.mxu0 %v2869_v60  ;;  %v159_v43 = vrot.slane %v150_v38, %v158_v41  ;;  %v163_v5 = vrot.slane %v150_v38, %v162_v44 }
  0xf7   :  { %448 = vmatprep.subr.bf16.mxu1 %v2873_v63  ;;  %489 = vmatprep.subr.bf16.mxu0 %v2875_v0  ;;  %v155_v42 = vrot.slane %v150_v38, %v154_v37 }
  0xf8   :  { %476 = vmatprep.mubr.bf16.mxu1 %v3492_v19  ;;  %517 = vmatprep.mubr.bf16.mxu0 %v3492_v19 }
  0xfa   :  { %449 = vmatpush1.bf16.msra.mxu1 %v2883_v7  ;;  %490 = vmatpush1.bf16.msra.mxu0 %v2885_v8 }
  0xfb   :  { %450 = vmatprep.subr.bf16.mxu1 %v2889_v11  ;;  %491 = vmatprep.subr.bf16.mxu0 %v2891_v12 }
  0xfe   :  { %451 = vmatpush1.bf16.msra.mxu1 %v2897_v20  ;;  %492 = vmatpush1.bf16.msra.mxu0 %v2899_v21 }
  0xff   :  { %452 = vmatprep.subr.bf16.mxu1 %v2903_v24  ;;  %493 = vmatprep.subr.bf16.mxu0 %v2905_v25 }
 0x102   :  { %453 = vmatpush1.bf16.msra.mxu1 %v2909_v32  ;;  %494 = vmatpush1.bf16.msra.mxu0 %v2911_v34 }
 0x103   :  { %454 = vmatprep.subr.bf16.mxu1 %v2915_v39  ;;  %495 = vmatprep.subr.bf16.mxu0 %v2917_v40 }
 0x106   :  { %455 = vmatpush1.bf16.msra.mxu1 %v2921_v49  ;;  %496 = vmatpush1.bf16.msra.mxu0 %v2923_v50 }
 0x107   :  { %456 = vmatprep.subr.bf16.mxu1 %v2927_v53  ;;  %497 = vmatprep.subr.bf16.mxu0 %v2929_v56 }
 0x10a   :  { %457 = vmatpush1.bf16.msra.mxu1 %v2933_v3  ;;  %498 = vmatpush1.bf16.msra.mxu0 %v2935_v4 }
 0x10b   :  { %458 = vmatprep.subr.bf16.mxu1 %v2939_v6  ;;  %499 = vmatprep.subr.bf16.mxu0 %v2941_v9 }
 0x10e   :  { %459 = vmatpush1.bf16.msra.mxu1 %v2945_v15  ;;  %500 = vmatpush1.bf16.msra.mxu0 %v2947_v16 }
 0x10f   :  { %609 = vmatprep.subr.bf16.mxu1 %v2845_v33  ;;  %650 = vmatprep.subr.bf16.mxu0 %v2847_v35 }
 0x111   :  { %477 = vmatmul.mubr.bf16.vlgmr.msra.gmra.mrb[8].mxu1 %v3492_v19  ;;  %518 = vmatmul.mubr.bf16.vlgmr.msra.gmra.mrb[4].mxu0 %v3492_v19 }
 0x112   :  { %610 = vmatpush1.bf16.msra.mxu1 %v2853_v45  ;;  %651 = vmatpush1.bf16.msra.mxu0 %v2855_v46 }
 0x113   :  { %611 = vmatprep.subr.bf16.mxu1 %v2858_v54  ;;  %652 = vmatprep.subr.bf16.mxu0 %v2860_v55 }
 0x114   :  { %641 = vmatprep.mubr.bf16.mxu1 %v3492_v19  ;;  %682 = vmatprep.mubr.bf16.mxu0 %v3492_v19 }
 0x116   :  { %612 = vmatpush1.bf16.msra.mxu1 %v2867_v59  ;;  %653 = vmatpush1.bf16.msra.mxu0 %v2869_v60 }
 0x117   :  { %613 = vmatprep.subr.bf16.mxu1 %v2873_v63  ;;  %654 = vmatprep.subr.bf16.mxu0 %v2875_v0 }
 0x11a   :  { %614 = vmatpush1.bf16.msra.mxu1 %v2883_v7  ;;  %655 = vmatpush1.bf16.msra.mxu0 %v2885_v8 }
 0x11b   :  { %615 = vmatprep.subr.bf16.mxu1 %v2889_v11  ;;  %656 = vmatprep.subr.bf16.mxu0 %v2891_v12 }
 0x11e   :  { %616 = vmatpush1.bf16.msra.mxu1 %v2897_v20  ;;  %657 = vmatpush1.bf16.msra.mxu0 %v2899_v21 }
 0x11f   :  { %617 = vmatprep.subr.bf16.mxu1 %v2903_v24  ;;  %658 = vmatprep.subr.bf16.mxu0 %v2905_v25 }
 0x122   :  { %618 = vmatpush1.bf16.msra.mxu1 %v2909_v32  ;;  %659 = vmatpush1.bf16.msra.mxu0 %v2911_v34 }
 0x123   :  { %619 = vmatprep.subr.bf16.mxu1 %v2915_v39  ;;  %660 = vmatprep.subr.bf16.mxu0 %v2917_v40 }
 0x126   :  { %620 = vmatpush1.bf16.msra.mxu1 %v2921_v49  ;;  %661 = vmatpush1.bf16.msra.mxu0 %v2923_v50 }
 0x127   :  { %621 = vmatprep.subr.bf16.mxu1 %v2927_v53  ;;  %662 = vmatprep.subr.bf16.mxu0 %v2929_v56 }
 0x12a   :  { %622 = vmatpush1.bf16.msra.mxu1 %v2933_v3  ;;  %663 = vmatpush1.bf16.msra.mxu0 %v2935_v4 }
 0x12b   :  { %623 = vmatprep.subr.bf16.mxu1 %v2939_v6  ;;  %664 = vmatprep.subr.bf16.mxu0 %v2941_v9 }
 0x12e   :  { %624 = vmatpush1.bf16.msra.mxu1 %v2945_v15  ;;  %665 = vmatpush1.bf16.msra.mxu0 %v2947_v16 }
 0x12f   :  { %779 = vmatprep.subr.bf16.mxu1 %v2845_v33  ;;  %820 = vmatprep.subr.bf16.mxu0 %v2847_v35 }
 0x1c4   :  { %v260_v17 = vpop.f32.mrb[2].mxu1  ;;  %v337_v18 = vpop.f32.mrb[0].mxu0 }
 0x1c5   :  { %v262_v22 = vpop.f32.mrb[3].mxu1  ;;  %v339_v23 = vpop.f32.mrb[1].mxu0  ;;  %v2994_v47 = vadd.f32 %v260_v17, %v155_v42  ;;  %v3006_v44 = vadd.f32 %v337_v18, %v163_v5 }
 0x1c6   :  { %v2996_v48 = vadd.f32 %v262_v22, %v159_v43 }
 0x1c8   :  { %v266_v26 = vpop.f32.mrb[4].mxu1  ;;  %v343_v27 = vpop.f32.mrb[2].mxu0 }
 0x1c9   :  { %v268_v28 = vpop.f32.mrb[5].mxu1  ;;  %v345_v29 = vpop.f32.mrb[3].mxu0  ;;  %v2998_v58 = vadd.f32 %v266_v26, %v155_v42  ;;  %v167_v26 = vrot.slane %v150_v38, %v166_v51 }
 0x1ca   :  { %v3001_v10 = vadd.f32 %v268_v28, %v159_v43  ;;  %v3008_v43 = vadd.f32 %v343_v27, %v163_v5 }
 0x1e4   :  { %v478_v52 = vpop.f32.mrb[8].mxu1  ;;  %v519_v57 = vpop.f32.mrb[4].mxu0 }
 0x1e5   :  { %v530_v61 = vrot.slane %v478_v52, 1  ;;  %v542_v62 = vadd.f32 %v478_v52, %v2994_v47  ;;  %v480_v1 = vpop.f32.mrb[9].mxu1  ;;  %v521_v2 = vpop.f32.mrb[5].mxu0  ;;  %v532_v36 = vrot.slane %v519_v57, 1 }
 0x1e6   :  { %v531_v13 = vrot.slane %v480_v1, 1  ;;  %v543_v14 = vadd.f32 %v480_v1, %v2996_v48  ;;  %v482_v17 = vpop.f32.mrb[10].mxu1  ;;  %v523_v30 = vpop.f32.mrb[6].mxu0  ;;  %v544_v1 = vadd.f32 %v519_v57, %v3006_v44  ;;  %v533_v38 = vrot.slane %v521_v2, 1 }
 0x1e7   :  { %v546_v22 = vadd.f32 %v530_v61, %v2998_v58  ;;  %v2129_v31 = vmul.f32 -1.442695, %v542_v62  ;;  %v483_v37 = vpop.f32.mrb[11].mxu1  ;;  %v524_v41 = vpop.f32.mrb[7].mxu0  ;;  %v3011_v17 = vadd.f32 %v339_v23, %v167_v26  ;;  %v548_v61 = vadd.f32 %v532_v36, %v3008_v43 }
 0x1e8   :  { %v547_v42 = vadd.f32 %v531_v13, %v3001_v10  ;;  %v2130_v19 = vmul.f32 -1.442695, %v543_v14  ;;  %v2131_v62 = vmul.f32 -1.442695, %v544_v1  ;;  %v3015_v13 = vadd.f32 %v345_v29, %v167_v26 }
 0x1e9   :  { %2357 = vpow2.f32 %v2129_v31  ;;  %v2132_v52 = vmul.f32 -1.442695, %v546_v22  ;;  %v545_v51 = vadd.f32 %v521_v2, %v3011_v17  ;;  %v2134_v18 = vmul.f32 -1.442695, %v548_v61 }
 0x1ea   :  { %v2133_v28 = vmul.f32 -1.442695, %v547_v42  ;;  %v549_v27 = vadd.f32 %v533_v38, %v3015_v13 }
 0x1eb   :  { %2359 = vpow2.f32 %v2132_v52 }
 0x1ec   :  { %2361 = vpow2.f32 %v2130_v19 }
 0x1ed   :  { %2363 = vpow2.f32 %v2133_v28 }
 0x1ee   :  { %2365 = vtanh.f32 %v545_v51 }
 0x1ef   :  { %2367 = vpow2.f32 %v2131_v62 }
 0x1f0   :  { %2369 = vpow2.f32 %v2134_v18 }
 0x1f3   :  { %v2358_v14 = vpop.eup %2357 }
 0x1f4   :  { %v568_v5 = vadd.f32 1.0, %v2358_v14 }
 0x1f5   :  { %v2360_v57 = vpop.eup %2359 }
 0x1f6   :  { %v571_v23 = vadd.f32 1.0, %v2360_v57  ;;  %2371 = vrcp.f32 %v568_v5  ;;  %v2362_v36 = vpop.eup %2361 }
 0x1f7   :  { %2373 = vtanh.f32 %v549_v27  ;;  %v2364_v19 = vpop.eup %2363  ;;  %v569_v30 = vadd.f32 1.0, %v2362_v36 }
 0x1f8   :  { %2375 = vrcp.f32 %v571_v23  ;;  %v572_v2 = vadd.f32 1.0, %v2364_v19  ;;  %v2366_v29 = vpop.eup %2365 }
 0x1f9   :  { %2377 = vrcp.f32 %v569_v30  ;;  %v2368_v22 = vpop.eup %2367 }
 0x1fa   :  { %2379 = vrcp.f32 %v572_v2  ;;  %v2370_v31 = vpop.eup %2369  ;;  %v570_v52 = vadd.f32 1.0, %v2368_v22 }
 0x1fb   :  { %v573_v61 = vadd.f32 1.0, %v2370_v31 }
 0x1fc   :  { %2381 = vrcp.f32 %v570_v52 }
 0x1fd   :  { %2383 = vrcp.f32 %v573_v61 }
 0x200   :  { %v2372_v37 = vpop.eup %2371 }
 0x201   :  { %v2374_v41 = vpop.eup %2373  ;;  %v590_v26 = vmul.f32 %v2372_v37, %v2366_v29 }
 0x202   :  { %v2376_v42 = vpop.eup %2375 }
 0x203   :  { %v591_v28 = vmul.f32 %v2376_v42, %v2374_v41  ;;  %v2378_v1 = vpop.eup %2377 }
 0x204   :  { %v2380_v38 = vpop.eup %2379  ;;  %v588_v51 = vmul.f32 0.0, %v2378_v1 }
 0x205   :  { %v589_v62 = vmul.f32 0.0, %v2380_v38 }
 0x206   :  { %v3018_v18 = vadd.f32 %v590_v26, %v588_v51  ;;  %v2382_v27 = vpop.eup %2381  ;;  %v3496_v26 = vmov 0  }
 0x207   :  { %v3020_v14 = vadd.f32 %v591_v28, %v589_v62  ;;  %v2384_v5 = vpop.eup %2383 }
 0x208   :  { %2385 = vtanh.f32 %v3018_v18 }
 0x209   :  { %2387 = vtanh.f32 %v3020_v14 }
 0x212   :  { %v2386_v57 = vpop.eup %2385 }
 0x213   :  { %v2388_v23 = vpop.eup %2387  ;;  %v596_v36 = vmul.f32 %v2386_v57, %v2382_v27 }
 0x214   :  { %v597_v19 = vmul.f32 %v2388_v23, %v2384_v5 }
 0x215   :  { %v598_v30 = vpack.c.bf16 %v596_v36, %v596_v36 }
 0x216   :  { %v599_v2 = vpack.c.bf16 %v597_v19, %v597_v19 }
 0x217   :  { %v602_v22 = vunpack.c.l.b16 %v598_v30 }
 0x218   :  { %v603_v29 = vunpack.c.l.b16 %v599_v2 }
 0x21a   :  { %v604_v31 = vrot.slane %v603_v29, 7 }
 0x21c   :  { %v606_v37 = vsel %vm605_vm5, %v604_v31, %v602_v22 }
 0x21d   :  { %v607_v41 = vpack.c.b16 %v606_v37, %v606_v37 }
 0x21f   :  { %642 = vmatmul.mubr.bf16.vlgmr.msra.gmra.mrb[12].mxu1 %v607_v41  ;;  %683 = vmatmul.mubr.bf16.vlgmr.msra.gmra.mrb[8].mxu0 %v607_v41 }
 0x220   :  { %780 = vmatpush1.bf16.msra.mxu1 %v2853_v45  ;;  %821 = vmatpush1.bf16.msra.mxu0 %v2855_v46 }
 0x221   :  { %781 = vmatprep.subr.bf16.mxu1 %v2858_v54  ;;  %822 = vmatprep.subr.bf16.mxu0 %v2860_v55 }
 0x222   :  { %811 = vmatprep.mubr.bf16.mxu1 %v3496_v26  ;;  %852 = vmatprep.mubr.bf16.mxu0 %v3496_v26 }
 0x224   :  { %782 = vmatpush1.bf16.msra.mxu1 %v2867_v59  ;;  %823 = vmatpush1.bf16.msra.mxu0 %v2869_v60 }
 0x225   :  { %783 = vmatprep.subr.bf16.mxu1 %v2873_v63  ;;  %824 = vmatprep.subr.bf16.mxu0 %v2875_v0 }
 0x228   :  { %784 = vmatpush1.bf16.msra.mxu1 %v2883_v7  ;;  %825 = vmatpush1.bf16.msra.mxu0 %v2885_v8 }
 0x229   :  { %785 = vmatprep.subr.bf16.mxu1 %v2889_v11  ;;  %826 = vmatprep.subr.bf16.mxu0 %v2891_v12 }
 0x22c   :  { %786 = vmatpush1.bf16.msra.mxu1 %v2897_v20  ;;  %827 = vmatpush1.bf16.msra.mxu0 %v2899_v21 }
 0x22d   :  { %787 = vmatprep.subr.bf16.mxu1 %v2903_v24  ;;  %828 = vmatprep.subr.bf16.mxu0 %v2905_v25 }
 0x230   :  { %788 = vmatpush1.bf16.msra.mxu1 %v2909_v32  ;;  %829 = vmatpush1.bf16.msra.mxu0 %v2911_v34 }
 0x231   :  { %789 = vmatprep.subr.bf16.mxu1 %v2915_v39  ;;  %830 = vmatprep.subr.bf16.mxu0 %v2917_v40 }
 0x234   :  { %790 = vmatpush1.bf16.msra.mxu1 %v2921_v49  ;;  %831 = vmatpush1.bf16.msra.mxu0 %v2923_v50 }
 0x235   :  { %791 = vmatprep.subr.bf16.mxu1 %v2927_v53  ;;  %832 = vmatprep.subr.bf16.mxu0 %v2929_v56 }
 0x238   :  { %792 = vmatpush1.bf16.msra.mxu1 %v2933_v3  ;;  %833 = vmatpush1.bf16.msra.mxu0 %v2935_v4 }
 0x239   :  { %793 = vmatprep.subr.bf16.mxu1 %v2939_v6  ;;  %834 = vmatprep.subr.bf16.mxu0 %v2941_v9 }
 0x23c   :  { %794 = vmatpush1.bf16.msra.mxu1 %v2945_v15  ;;  %835 = vmatpush1.bf16.msra.mxu0 %v2947_v16 }
 0x23d   :  { %954 = vmatprep.subr.bf16.mxu1 %v2845_v33  ;;  %995 = vmatprep.subr.bf16.mxu0 %v2847_v35 }
 0x2f2   :  { %v643_v42 = vpop.f32.mrb[12].mxu1  ;;  %v684_v52 = vpop.f32.mrb[8].mxu0 }
 0x2f3   :  { %v695_v28 = vrot.slane %v643_v42, 7  ;;  %v711_v1 = vadd.f32 %v643_v42, %v2998_v58  ;;  %v645_v61 = vpop.f32.mrb[13].mxu1  ;;  %v686_v38 = vpop.f32.mrb[9].mxu0  ;;  %v697_v29 = vrot.slane %v684_v52, 7  ;;  %v713_v37 = vadd.f32 %v684_v52, %v3008_v43 }
 0x2f4   :  { %v696_v51 = vrot.slane %v645_v61, 7  ;;  %v712_v62 = vadd.f32 %v645_v61, %v3001_v10  ;;  %v647_v27 = vpop.f32.mrb[14].mxu1  ;;  %v688_v5 = vpop.f32.mrb[10].mxu0  ;;  %v698_v42 = vrot.slane %v686_v38, 7 }
 0x2f5   :  { %v707_v57 = vadd.f32 %v695_v28, %v2994_v47  ;;  %v2138_v23 = vmul.f32 -1.442695, %v711_v1  ;;  %v648_v36 = vpop.f32.mrb[15].mxu1  ;;  %v689_v19 = vpop.f32.mrb[11].mxu0  ;;  %v709_v41 = vadd.f32 %v697_v29, %v3006_v44  ;;  %v714_v28 = vadd.f32 %v686_v38, %v3015_v13 }
 0x2f6   :  { %v708_v30 = vadd.f32 %v696_v51, %v2996_v48  ;;  %v2139_v31 = vmul.f32 -1.442695, %v712_v62  ;;  %v2140_v1 = vmul.f32 -1.442695, %v713_v37  ;;  %v710_v51 = vadd.f32 %v698_v42, %v3011_v17 }
 0x2f7   :  { %v2135_v2 = vmul.f32 -1.442695, %v707_v57  ;;  %2389 = vpow2.f32 %v2138_v23  ;;  %v2137_v61 = vmul.f32 -1.442695, %v709_v41  ;;  %v755_v41 = vrot.slane %v3018_v18, 7 }
 0x2f8   :  { %v2136_v22 = vmul.f32 -1.442695, %v708_v30 }
 0x2f9   :  { %2391 = vpow2.f32 %v2135_v2 }
 0x2fa   :  { %2393 = vpow2.f32 %v2136_v22 }
 0x2fb   :  { %2395 = vpow2.f32 %v2139_v31 }
 0x2fc   :  { %2397 = vtanh.f32 %v714_v28 }
 0x2fd   :  { %2399 = vpow2.f32 %v2140_v1 }
 0x2fe   :  { %2401 = vpow2.f32 %v2137_v61 }
 0x301   :  { %v2390_v27 = vpop.eup %2389 }
 0x302   :  { %v736_v5 = vadd.f32 1.0, %v2390_v27  ;;  %v756_v27 = vrot.slane %v3020_v14, 7 }
 0x303   :  { %v2392_v57 = vpop.eup %2391 }
 0x304   :  { %v733_v62 = vadd.f32 1.0, %v2392_v57  ;;  %2403 = vrcp.f32 %v736_v5  ;;  %v2394_v52 = vpop.eup %2393 }
 0x305   :  { %2405 = vtanh.f32 %v710_v51  ;;  %v2396_v23 = vpop.eup %2395  ;;  %v734_v36 = vadd.f32 1.0, %v2394_v52 }
 0x306   :  { %2407 = vrcp.f32 %v733_v62  ;;  %v737_v19 = vadd.f32 1.0, %v2396_v23  ;;  %v2398_v38 = vpop.eup %2397 }
 0x307   :  { %2409 = vrcp.f32 %v734_v36  ;;  %v2400_v30 = vpop.eup %2399 }
 0x308   :  { %2411 = vrcp.f32 %v737_v19  ;;  %v2402_v2 = vpop.eup %2401  ;;  %v738_v42 = vadd.f32 1.0, %v2400_v30 }
 0x309   :  { %v735_v61 = vadd.f32 1.0, %v2402_v2 }
 0x30a   :  { %2413 = vrcp.f32 %v738_v42 }
 0x30b   :  { %2415 = vrcp.f32 %v735_v61 }
 0x30e   :  { %v2404_v29 = vpop.eup %2403 }
 0x30f   :  { %v2406_v22 = vpop.eup %2405  ;;  %v762_v31 = vmul.f32 %v2404_v29, %v2398_v38 }
 0x310   :  { %v2408_v37 = vpop.eup %2407 }
 0x311   :  { %v761_v28 = vmul.f32 %v2408_v37, %v2406_v22  ;;  %v2410_v1 = vpop.eup %2409 }
 0x312   :  { %v2412_v51 = vpop.eup %2411  ;;  %v759_v5 = vmul.f32 %v2410_v1, %v755_v41 }
 0x313   :  { %v760_v57 = vmul.f32 %v2412_v51, %v756_v27 }
 0x314   :  { %v3069_v62 = vadd.f32 %v761_v28, %v759_v5  ;;  %v2414_v18 = vpop.eup %2413 }
 0x315   :  { %v3071_v52 = vadd.f32 %v762_v31, %v760_v57  ;;  %v2416_v23 = vpop.eup %2415 }
 0x316   :  { %2417 = vtanh.f32 %v3069_v62 }
 0x317   :  { %2419 = vtanh.f32 %v3071_v52 }
 0x320   :  { %v2418_v36 = vpop.eup %2417 }
 0x321   :  { %v2420_v19 = vpop.eup %2419  ;;  %v767_v38 = vmul.f32 %v2418_v36, %v2416_v23 }
 0x322   :  { %v768_v30 = vmul.f32 %v2420_v19, %v2414_v18 }
 0x323   :  { %v769_v14 = vpack.c.bf16 %v767_v38, %v767_v38 }
 0x324   :  { %v770_v2 = vpack.c.bf16 %v768_v30, %v768_v30 }
 0x325   :  { %v773_v29 = vunpack.c.l.b16 %v769_v14 }
 0x326   :  { %v774_v22 = vunpack.c.l.b16 %v770_v2 }
 0x327   :  { %v775_v37 = vrot.slane %v773_v29, 1 }
 0x329   :  { %v776_v41 = vsel %vm605_vm5, %v774_v22, %v775_v37 }
 0x32a   :  { %v777_v42 = vpack.c.b16 %v776_v41, %v776_v41 }
 0x32c   :  { %812 = vmatmul.mubr.bf16.vlgmr.msra.gmra.mrb[16].mxu1 %v777_v42  ;;  %853 = vmatmul.mubr.bf16.vlgmr.msra.gmra.mrb[12].mxu0 %v777_v42 }
 0x32d   :  { %955 = vmatpush1.bf16.msra.mxu1 %v2853_v45  ;;  %996 = vmatpush1.bf16.msra.mxu0 %v2855_v46 }
 0x32e   :  { %956 = vmatprep.subr.bf16.mxu1 %v2858_v54  ;;  %997 = vmatprep.subr.bf16.mxu0 %v2860_v55 }
 0x32f   :  { %986 = vmatprep.mubr.bf16.mxu1 %v3496_v26  ;;  %1027 = vmatprep.mubr.bf16.mxu0 %v3496_v26 }
 0x331   :  { %957 = vmatpush1.bf16.msra.mxu1 %v2867_v59  ;;  %998 = vmatpush1.bf16.msra.mxu0 %v2869_v60 }
 0x332   :  { %958 = vmatprep.subr.bf16.mxu1 %v2873_v63  ;;  %999 = vmatprep.subr.bf16.mxu0 %v2875_v0 }
 0x335   :  { %959 = vmatpush1.bf16.msra.mxu1 %v2883_v7  ;;  %1000 = vmatpush1.bf16.msra.mxu0 %v2885_v8 }
 0x336   :  { %960 = vmatprep.subr.bf16.mxu1 %v2889_v11  ;;  %1001 = vmatprep.subr.bf16.mxu0 %v2891_v12 }
 0x339   :  { %961 = vmatpush1.bf16.msra.mxu1 %v2897_v20  ;;  %1002 = vmatpush1.bf16.msra.mxu0 %v2899_v21 }
 0x33a   :  { %962 = vmatprep.subr.bf16.mxu1 %v2903_v24  ;;  %1003 = vmatprep.subr.bf16.mxu0 %v2905_v25 }
 0x33d   :  { %963 = vmatpush1.bf16.msra.mxu1 %v2909_v32  ;;  %1004 = vmatpush1.bf16.msra.mxu0 %v2911_v34 }
 0x33e   :  { %964 = vmatprep.subr.bf16.mxu1 %v2915_v39  ;;  %1005 = vmatprep.subr.bf16.mxu0 %v2917_v40 }
 0x341   :  { %965 = vmatpush1.bf16.msra.mxu1 %v2921_v49  ;;  %1006 = vmatpush1.bf16.msra.mxu0 %v2923_v50 }
 0x342   :  { %966 = vmatprep.subr.bf16.mxu1 %v2927_v53  ;;  %1007 = vmatprep.subr.bf16.mxu0 %v2929_v56 }
 0x345   :  { %967 = vmatpush1.bf16.msra.mxu1 %v2933_v3  ;;  %1008 = vmatpush1.bf16.msra.mxu0 %v2935_v4 }
 0x346   :  { %968 = vmatprep.subr.bf16.mxu1 %v2939_v6  ;;  %1009 = vmatprep.subr.bf16.mxu0 %v2941_v9 }
 0x349   :  { %969 = vmatpush1.bf16.msra.mxu1 %v2945_v15  ;;  %1010 = vmatpush1.bf16.msra.mxu0 %v2947_v16 }
 0x34a   :  { %1129 = vmatprep.subr.bf16.mxu1 %v2845_v33  ;;  %1170 = vmatprep.subr.bf16.mxu0 %v2847_v35 }
 0x3ff   :  { %v813_v31 = vpop.f32.mrb[16].mxu1  ;;  %v854_v28 = vpop.f32.mrb[12].mxu0 }
 0x400   :  { %v865_v1 = vrot.slane %v813_v31, 6  ;;  %v869_v61 = vrot.slane %v813_v31, 7  ;;  %v815_v27 = vpop.f32.mrb[17].mxu1  ;;  %v856_v51 = vpop.f32.mrb[13].mxu0  ;;  %v867_v37 = vrot.slane %v854_v28, 6  ;;  %v871_v41 = vrot.slane %v854_v28, 7 }
 0x401   :  { %v866_v5 = vrot.slane %v815_v27, 6  ;;  %v870_v57 = vrot.slane %v815_v27, 7  ;;  %v817_v18 = vpop.f32.mrb[18].mxu1  ;;  %v858_v23 = vpop.f32.mrb[14].mxu0  ;;  %v868_v27 = vrot.slane %v856_v51, 6 }
 0x402   :  { %v881_v36 = vadd.f32 %v865_v1, %v2994_v47  ;;  %v885_v19 = vadd.f32 %v869_v61, %v2998_v58  ;;  %v818_v38 = vpop.f32.mrb[19].mxu1  ;;  %v859_v30 = vpop.f32.mrb[15].mxu0  ;;  %v883_v18 = vadd.f32 %v867_v37, %v3006_v44  ;;  %v887_v1 = vadd.f32 %v871_v41, %v3008_v43 }
 0x403   :  { %v882_v14 = vadd.f32 %v866_v5, %v2996_v48  ;;  %v886_v2 = vadd.f32 %v870_v57, %v3001_v10  ;;  %v872_v61 = vrot.slane %v856_v51, 7  ;;  %v884_v5 = vadd.f32 %v868_v27, %v3011_v17 }
 0x404   :  { %v2141_v29 = vmul.f32 -1.442695, %v881_v36  ;;  %v2144_v22 = vmul.f32 -1.442695, %v885_v19  ;;  %v2143_v23 = vmul.f32 -1.442695, %v883_v18 }
 0x405   :  { %v2142_v42 = vmul.f32 -1.442695, %v882_v14  ;;  %v2145_v31 = vmul.f32 -1.442695, %v886_v2  ;;  %v2146_v57 = vmul.f32 -1.442695, %v887_v1  ;;  %v888_v36 = vadd.f32 %v872_v61, %v3015_v13 }
 0x406   :  { %2421 = vpow2.f32 %v2141_v29  ;;  %v929_v61 = vrot.slane %v3069_v62, 7 }
 0x407   :  { %2423 = vpow2.f32 %v2144_v22 }
 0x408   :  { %2425 = vpow2.f32 %v2142_v42 }
 0x409   :  { %2427 = vpow2.f32 %v2145_v31 }
 0x40a   :  { %2429 = vtanh.f32 %v884_v5 }
 0x40b   :  { %2431 = vpow2.f32 %v2143_v23 }
 0x40c   :  { %2433 = vpow2.f32 %v2146_v57  ;;  %v930_v57 = vrot.slane %v3071_v52, 7 }
 0x40d   :  { %2435 = vtanh.f32 %v888_v36 }
 0x410   :  { %v2422_v28 = vpop.eup %2421 }
 0x411   :  { %v2424_v19 = vpop.eup %2423  ;;  %v907_v38 = vadd.f32 1.0, %v2422_v28 }
 0x412   :  { %v910_v30 = vadd.f32 1.0, %v2424_v19  ;;  %v2426_v14 = vpop.eup %2425 }
 0x413   :  { %2437 = vrcp.f32 %v907_v38  ;;  %v2428_v2 = vpop.eup %2427  ;;  %v908_v51 = vadd.f32 1.0, %v2426_v14 }
 0x414   :  { %2439 = vrcp.f32 %v910_v30  ;;  %v911_v29 = vadd.f32 1.0, %v2428_v2  ;;  %v2430_v22 = vpop.eup %2429 }
 0x415   :  { %2441 = vrcp.f32 %v908_v51  ;;  %v2432_v37 = vpop.eup %2431 }
 0x416   :  { %2443 = vrcp.f32 %v911_v29  ;;  %v2434_v41 = vpop.eup %2433  ;;  %v909_v5 = vadd.f32 1.0, %v2432_v37 }
 0x417   :  { %v2436_v42 = vpop.eup %2435  ;;  %v912_v36 = vadd.f32 1.0, %v2434_v41 }
 0x418   :  { %2445 = vrcp.f32 %v909_v5 }
 0x419   :  { %2447 = vrcp.f32 %v912_v36 }
 0x41d   :  { %v2438_v31 = vpop.eup %2437 }
 0x41e   :  { %v2440_v27 = vpop.eup %2439  ;;  %v935_v18 = vmul.f32 %v2438_v31, %v2430_v22 }
 0x41f   :  { %v936_v1 = vmul.f32 %v2440_v27, %v2436_v42  ;;  %v2442_v23 = vpop.eup %2441 }
 0x420   :  { %v2444_v28 = vpop.eup %2443  ;;  %v933_v19 = vmul.f32 %v2442_v23, %v929_v61 }
 0x421   :  { %v934_v38 = vmul.f32 %v2444_v28, %v930_v57 }
 0x422   :  { %v3120_v30 = vadd.f32 %v935_v18, %v933_v19  ;;  %v2446_v2 = vpop.eup %2445 }
 0x423   :  { %v3122_v14 = vadd.f32 %v936_v1, %v934_v38  ;;  %v2448_v62 = vpop.eup %2447 }
 0x424   :  { %2449 = vtanh.f32 %v3120_v30 }
 0x425   :  { %2451 = vtanh.f32 %v3122_v14 }
 0x42e   :  { %v2450_v51 = vpop.eup %2449 }
 0x42f   :  { %v2452_v29 = vpop.eup %2451  ;;  %v941_v22 = vmul.f32 %v2450_v51, %v2446_v2 }
 0x430   :  { %v942_v52 = vmul.f32 %v2452_v29, %v2448_v62 }
 0x431   :  { %v943_v37 = vpack.c.bf16 %v941_v22, %v941_v22 }
 0x432   :  { %v944_v41 = vpack.c.bf16 %v942_v52, %v942_v52 }
 0x433   :  { %v947_v42 = vunpack.c.l.b16 %v943_v37 }
 0x434   :  { %v948_v31 = vunpack.c.l.b16 %v944_v41 }
 0x435   :  { %v949_v27 = vrot.slane %v947_v42, 2 }
 0x436   :  { %v950_v18 = vrot.slane %v948_v31, 1 }
 0x438   :  { %v951_v61 = vsel %vm605_vm5, %v950_v18, %v949_v27 }
 0x439   :  { %v952_v1 = vpack.c.b16 %v951_v61, %v951_v61 }
 0x43b   :  { %987 = vmatmul.mubr.bf16.vlgmr.msra.gmra.mrb[20].mxu1 %v952_v1  ;;  %1028 = vmatmul.mubr.bf16.vlgmr.msra.gmra.mrb[16].mxu0 %v952_v1 }
 0x43c   :  { %1130 = vmatpush1.bf16.msra.mxu1 %v2853_v45  ;;  %1171 = vmatpush1.bf16.msra.mxu0 %v2855_v46 }
 0x43d   :  { %1131 = vmatprep.subr.bf16.mxu1 %v2858_v54  ;;  %1172 = vmatprep.subr.bf16.mxu0 %v2860_v55 }
 0x43e   :  { %1161 = vmatprep.mubr.bf16.mxu1 %v3496_v26  ;;  %1202 = vmatprep.mubr.bf16.mxu0 %v3496_v26 }
 0x440   :  { %1132 = vmatpush1.bf16.msra.mxu1 %v2867_v59  ;;  %1173 = vmatpush1.bf16.msra.mxu0 %v2869_v60 }
 0x441   :  { %1133 = vmatprep.subr.bf16.mxu1 %v2873_v63  ;;  %1174 = vmatprep.subr.bf16.mxu0 %v2875_v0 }
 0x444   :  { %1134 = vmatpush1.bf16.msra.mxu1 %v2883_v7  ;;  %1175 = vmatpush1.bf16.msra.mxu0 %v2885_v8 }
 0x445   :  { %1135 = vmatprep.subr.bf16.mxu1 %v2889_v11  ;;  %1176 = vmatprep.subr.bf16.mxu0 %v2891_v12 }
 0x448   :  { %1136 = vmatpush1.bf16.msra.mxu1 %v2897_v20  ;;  %1177 = vmatpush1.bf16.msra.mxu0 %v2899_v21 }
 0x449   :  { %1137 = vmatprep.subr.bf16.mxu1 %v2903_v24  ;;  %1178 = vmatprep.subr.bf16.mxu0 %v2905_v25 }
 0x44c   :  { %1138 = vmatpush1.bf16.msra.mxu1 %v2909_v32  ;;  %1179 = vmatpush1.bf16.msra.mxu0 %v2911_v34 }
 0x44d   :  { %1139 = vmatprep.subr.bf16.mxu1 %v2915_v39  ;;  %1180 = vmatprep.subr.bf16.mxu0 %v2917_v40 }
 0x450   :  { %1140 = vmatpush1.bf16.msra.mxu1 %v2921_v49  ;;  %1181 = vmatpush1.bf16.msra.mxu0 %v2923_v50 }
 0x451   :  { %1141 = vmatprep.subr.bf16.mxu1 %v2927_v53  ;;  %1182 = vmatprep.subr.bf16.mxu0 %v2929_v56 }
 0x454   :  { %1142 = vmatpush1.bf16.msra.mxu1 %v2933_v3  ;;  %1183 = vmatpush1.bf16.msra.mxu0 %v2935_v4 }
 0x455   :  { %1143 = vmatprep.subr.bf16.mxu1 %v2939_v6  ;;  %1184 = vmatprep.subr.bf16.mxu0 %v2941_v9 }
 0x458   :  { %1144 = vmatpush1.bf16.msra.mxu1 %v2945_v15  ;;  %1185 = vmatpush1.bf16.msra.mxu0 %v2947_v16 }
 0x459   :  { %1304 = vmatprep.subr.bf16.mxu1 %v2845_v33  ;;  %1345 = vmatprep.subr.bf16.mxu0 %v2847_v35 }
 0x50e   :  { %v988_v5 = vpop.f32.mrb[20].mxu1  ;;  %v1029_v23 = vpop.f32.mrb[16].mxu0 }
 0x50f   :  { %v1040_v57 = vrot.slane %v988_v5, 5  ;;  %v1044_v36 = vrot.slane %v988_v5, 6  ;;  %v990_v28 = vpop.f32.mrb[21].mxu1  ;;  %v1031_v19 = vpop.f32.mrb[17].mxu0  ;;  %v1042_v18 = vrot.slane %v1029_v23, 5  ;;  %v1046_v61 = vrot.slane %v1029_v23, 6 }
 0x510   :  { %v1041_v38 = vrot.slane %v990_v28, 5  ;;  %v1045_v2 = vrot.slane %v990_v28, 6  ;;  %v992_v62 = vpop.f32.mrb[22].mxu1  ;;  %v1033_v51 = vpop.f32.mrb[18].mxu0  ;;  %v1043_v28 = vrot.slane %v1031_v19, 5 }
 0x511   :  { %v1056_v29 = vadd.f32 %v1040_v57, %v2994_v47  ;;  %v1060_v22 = vadd.f32 %v1044_v36, %v2998_v58  ;;  %v993_v52 = vpop.f32.mrb[23].mxu1  ;;  %v1034_v37 = vpop.f32.mrb[19].mxu0  ;;  %v1058_v62 = vadd.f32 %v1042_v18, %v3006_v44  ;;  %v1062_v57 = vadd.f32 %v1046_v61, %v3008_v43 }
 0x512   :  { %v1057_v41 = vadd.f32 %v1041_v38, %v2996_v48  ;;  %v1061_v42 = vadd.f32 %v1045_v2, %v3001_v10  ;;  %v1047_v36 = vrot.slane %v1031_v19, 6  ;;  %v1059_v38 = vadd.f32 %v1043_v28, %v3011_v17 }
 0x513   :  { %v2147_v31 = vmul.f32 -1.442695, %v1056_v29  ;;  %v2150_v27 = vmul.f32 -1.442695, %v1060_v22  ;;  %v2149_v51 = vmul.f32 -1.442695, %v1058_v62 }
 0x514   :  { %v2148_v1 = vmul.f32 -1.442695, %v1057_v41  ;;  %v2151_v5 = vmul.f32 -1.442695, %v1061_v42  ;;  %v2152_v2 = vmul.f32 -1.442695, %v1062_v57  ;;  %v1063_v29 = vadd.f32 %v1047_v36, %v3015_v13 }
 0x515   :  { %2453 = vpow2.f32 %v2147_v31  ;;  %v1104_v36 = vrot.slane %v3120_v30, 7 }
 0x516   :  { %2455 = vpow2.f32 %v2150_v27 }
 0x517   :  { %2457 = vpow2.f32 %v2148_v1 }
 0x518   :  { %2459 = vpow2.f32 %v2151_v5 }
 0x519   :  { %2461 = vtanh.f32 %v1059_v38 }
 0x51a   :  { %2463 = vpow2.f32 %v2149_v51 }
 0x51b   :  { %2465 = vpow2.f32 %v2152_v2  ;;  %v1105_v2 = vrot.slane %v3122_v14, 7 }
 0x51c   :  { %2467 = vtanh.f32 %v1063_v29 }
 0x51f   :  { %v2454_v23 = vpop.eup %2453 }
 0x520   :  { %v2456_v22 = vpop.eup %2455  ;;  %v1082_v52 = vadd.f32 1.0, %v2454_v23 }
 0x521   :  { %v1085_v37 = vadd.f32 1.0, %v2456_v22  ;;  %v2458_v41 = vpop.eup %2457 }
 0x522   :  { %2469 = vrcp.f32 %v1082_v52  ;;  %v2460_v42 = vpop.eup %2459  ;;  %v1083_v19 = vadd.f32 1.0, %v2458_v41 }
 0x523   :  { %2471 = vrcp.f32 %v1085_v37  ;;  %v1086_v31 = vadd.f32 1.0, %v2460_v42  ;;  %v2462_v27 = vpop.eup %2461 }
 0x524   :  { %2473 = vrcp.f32 %v1083_v19  ;;  %v2464_v18 = vpop.eup %2463 }
 0x525   :  { %2475 = vrcp.f32 %v1086_v31  ;;  %v2466_v61 = vpop.eup %2465  ;;  %v1084_v38 = vadd.f32 1.0, %v2464_v18 }
 0x526   :  { %v2468_v1 = vpop.eup %2467  ;;  %v1087_v29 = vadd.f32 1.0, %v2466_v61 }
 0x527   :  { %2477 = vrcp.f32 %v1084_v38 }
 0x528   :  { %2479 = vrcp.f32 %v1087_v29 }
 0x52c   :  { %v2470_v5 = vpop.eup %2469 }
 0x52d   :  { %v2472_v28 = vpop.eup %2471  ;;  %v1110_v62 = vmul.f32 %v2470_v5, %v2462_v27 }
 0x52e   :  { %v1111_v57 = vmul.f32 %v2472_v28, %v2468_v1  ;;  %v2474_v51 = vpop.eup %2473 }
 0x52f   :  { %v2476_v23 = vpop.eup %2475  ;;  %v1108_v22 = vmul.f32 %v2474_v51, %v1104_v36 }
 0x530   :  { %v1109_v52 = vmul.f32 %v2476_v23, %v1105_v2 }
 0x531   :  { %v3171_v37 = vadd.f32 %v1110_v62, %v1108_v22  ;;  %v2478_v42 = vpop.eup %2477 }
 0x532   :  { %v3173_v41 = vadd.f32 %v1111_v57, %v1109_v52  ;;  %v2480_v30 = vpop.eup %2479 }
 0x533   :  { %2481 = vtanh.f32 %v3171_v37 }
 0x534   :  { %2483 = vtanh.f32 %v3173_v41 }
 0x53d   :  { %v2482_v19 = vpop.eup %2481 }
 0x53e   :  { %v2484_v31 = vpop.eup %2483  ;;  %v1116_v27 = vmul.f32 %v2482_v19, %v2478_v42 }
 0x53f   :  { %v1117_v14 = vmul.f32 %v2484_v31, %v2480_v30 }
 0x540   :  { %v1118_v18 = vpack.c.bf16 %v1116_v27, %v1116_v27 }
 0x541   :  { %v1119_v61 = vpack.c.bf16 %v1117_v14, %v1117_v14 }
 0x542   :  { %v1122_v1 = vunpack.c.l.b16 %v1118_v18 }
 0x543   :  { %v1123_v5 = vunpack.c.l.b16 %v1119_v61 }
 0x544   :  { %v1124_v28 = vrot.slane %v1122_v1, 3 }
 0x545   :  { %v1125_v62 = vrot.slane %v1123_v5, 2 }
 0x547   :  { %v1126_v36 = vsel %vm605_vm5, %v1125_v62, %v1124_v28 }
 0x548   :  { %v1127_v57 = vpack.c.b16 %v1126_v36, %v1126_v36 }
 0x54a   :  { %1162 = vmatmul.mubr.bf16.vlgmr.msra.gmra.mrb[24].mxu1 %v1127_v57  ;;  %1203 = vmatmul.mubr.bf16.vlgmr.msra.gmra.mrb[20].mxu0 %v1127_v57 }
 0x54b   :  { %1305 = vmatpush1.bf16.msra.mxu1 %v2853_v45  ;;  %1346 = vmatpush1.bf16.msra.mxu0 %v2855_v46 }
 0x54c   :  { %1306 = vmatprep.subr.bf16.mxu1 %v2858_v54  ;;  %1347 = vmatprep.subr.bf16.mxu0 %v2860_v55 }
 0x54d   :  { %1336 = vmatprep.mubr.bf16.mxu1 %v3496_v26  ;;  %1377 = vmatprep.mubr.bf16.mxu0 %v3496_v26 }
 0x54f   :  { %1307 = vmatpush1.bf16.msra.mxu1 %v2867_v59  ;;  %1348 = vmatpush1.bf16.msra.mxu0 %v2869_v60 }
 0x550   :  { %1308 = vmatprep.subr.bf16.mxu1 %v2873_v63  ;;  %1349 = vmatprep.subr.bf16.mxu0 %v2875_v0 }
 0x553   :  { %1309 = vmatpush1.bf16.msra.mxu1 %v2883_v7  ;;  %1350 = vmatpush1.bf16.msra.mxu0 %v2885_v8 }
 0x554   :  { %1310 = vmatprep.subr.bf16.mxu1 %v2889_v11  ;;  %1351 = vmatprep.subr.bf16.mxu0 %v2891_v12 }
 0x557   :  { %1311 = vmatpush1.bf16.msra.mxu1 %v2897_v20  ;;  %1352 = vmatpush1.bf16.msra.mxu0 %v2899_v21 }
 0x558   :  { %1312 = vmatprep.subr.bf16.mxu1 %v2903_v24  ;;  %1353 = vmatprep.subr.bf16.mxu0 %v2905_v25 }
 0x55b   :  { %1313 = vmatpush1.bf16.msra.mxu1 %v2909_v32  ;;  %1354 = vmatpush1.bf16.msra.mxu0 %v2911_v34 }
 0x55c   :  { %1314 = vmatprep.subr.bf16.mxu1 %v2915_v39  ;;  %1355 = vmatprep.subr.bf16.mxu0 %v2917_v40 }
 0x55f   :  { %1315 = vmatpush1.bf16.msra.mxu1 %v2921_v49  ;;  %1356 = vmatpush1.bf16.msra.mxu0 %v2923_v50 }
 0x560   :  { %1316 = vmatprep.subr.bf16.mxu1 %v2927_v53  ;;  %1357 = vmatprep.subr.bf16.mxu0 %v2929_v56 }
 0x563   :  { %1317 = vmatpush1.bf16.msra.mxu1 %v2933_v3  ;;  %1358 = vmatpush1.bf16.msra.mxu0 %v2935_v4 }
 0x564   :  { %1318 = vmatprep.subr.bf16.mxu1 %v2939_v6  ;;  %1359 = vmatprep.subr.bf16.mxu0 %v2941_v9 }
 0x567   :  { %1319 = vmatpush1.bf16.msra.mxu1 %v2945_v15  ;;  %1360 = vmatpush1.bf16.msra.mxu0 %v2947_v16 }
 0x568   :  { %1479 = vmatprep.subr.bf16.mxu1 %v2845_v33  ;;  %1520 = vmatprep.subr.bf16.mxu0 %v2847_v35 }
 0x61d   :  { %v1163_v38 = vpop.f32.mrb[24].mxu1  ;;  %v1204_v51 = vpop.f32.mrb[20].mxu0 }
 0x61e   :  { %v1215_v2 = vrot.slane %v1163_v38, 4  ;;  %v1219_v29 = vrot.slane %v1163_v38, 5  ;;  %v1165_v23 = vpop.f32.mrb[25].mxu1  ;;  %v1206_v22 = vpop.f32.mrb[21].mxu0  ;;  %v1217_v62 = vrot.slane %v1204_v51, 4  ;;  %v1221_v36 = vrot.slane %v1204_v51, 5 }
 0x61f   :  { %v1216_v52 = vrot.slane %v1165_v23, 4  ;;  %v1220_v42 = vrot.slane %v1165_v23, 5  ;;  %v1167_v30 = vpop.f32.mrb[26].mxu1  ;;  %v1208_v19 = vpop.f32.mrb[22].mxu0  ;;  %v1218_v23 = vrot.slane %v1206_v22, 4 }
 0x620   :  { %v1231_v31 = vadd.f32 %v1215_v2, %v2994_v47  ;;  %v1235_v27 = vadd.f32 %v1219_v29, %v2998_v58  ;;  %v1168_v14 = vpop.f32.mrb[27].mxu1  ;;  %v1209_v18 = vpop.f32.mrb[23].mxu0  ;;  %v1233_v30 = vadd.f32 %v1217_v62, %v3006_v44  ;;  %v1237_v2 = vadd.f32 %v1221_v36, %v3008_v43 }
 0x621   :  { %v1232_v61 = vadd.f32 %v1216_v52, %v2996_v48  ;;  %v1236_v1 = vadd.f32 %v1220_v42, %v3001_v10  ;;  %v1222_v29 = vrot.slane %v1206_v22, 5  ;;  %v1234_v52 = vadd.f32 %v1218_v23, %v3011_v17 }
 0x622   :  { %v2153_v5 = vmul.f32 -1.442695, %v1231_v31  ;;  %v2156_v28 = vmul.f32 -1.442695, %v1235_v27  ;;  %v2155_v19 = vmul.f32 -1.442695, %v1233_v30 }
 0x623   :  { %v2154_v57 = vmul.f32 -1.442695, %v1232_v61  ;;  %v2157_v38 = vmul.f32 -1.442695, %v1236_v1  ;;  %v2158_v42 = vmul.f32 -1.442695, %v1237_v2  ;;  %v1238_v31 = vadd.f32 %v1222_v29, %v3015_v13 }
 0x624   :  { %2485 = vpow2.f32 %v2153_v5  ;;  %v1279_v29 = vrot.slane %v3171_v37, 7 }
 0x625   :  { %2487 = vpow2.f32 %v2156_v28 }
 0x626   :  { %2489 = vpow2.f32 %v2154_v57 }
 0x627   :  { %2491 = vpow2.f32 %v2157_v38 }
 0x628   :  { %2493 = vtanh.f32 %v1234_v52 }
 0x629   :  { %2495 = vpow2.f32 %v2155_v19 }
 0x62a   :  { %2497 = vpow2.f32 %v2158_v42  ;;  %v1280_v42 = vrot.slane %v3173_v41, 7 }
 0x62b   :  { %2499 = vtanh.f32 %v1238_v31 }
 0x62e   :  { %v2486_v51 = vpop.eup %2485 }
 0x62f   :  { %v2488_v27 = vpop.eup %2487  ;;  %v1257_v14 = vadd.f32 1.0, %v2486_v51 }
 0x630   :  { %v1260_v18 = vadd.f32 1.0, %v2488_v27  ;;  %v2490_v61 = vpop.eup %2489 }
 0x631   :  { %2501 = vrcp.f32 %v1257_v14  ;;  %v2492_v1 = vpop.eup %2491  ;;  %v1258_v22 = vadd.f32 1.0, %v2490_v61 }
 0x632   :  { %2503 = vrcp.f32 %v1260_v18  ;;  %v1261_v5 = vadd.f32 1.0, %v2492_v1  ;;  %v2494_v28 = vpop.eup %2493 }
 0x633   :  { %2505 = vrcp.f32 %v1258_v22  ;;  %v2496_v62 = vpop.eup %2495 }
 0x634   :  { %2507 = vrcp.f32 %v1261_v5  ;;  %v2498_v36 = vpop.eup %2497  ;;  %v1259_v52 = vadd.f32 1.0, %v2496_v62 }
 0x635   :  { %v2500_v57 = vpop.eup %2499  ;;  %v1262_v31 = vadd.f32 1.0, %v2498_v36 }
 0x636   :  { %2509 = vrcp.f32 %v1259_v52 }
 0x637   :  { %2511 = vrcp.f32 %v1262_v31 }
 0x63b   :  { %v2502_v38 = vpop.eup %2501 }
 0x63c   :  { %v2504_v23 = vpop.eup %2503  ;;  %v1285_v30 = vmul.f32 %v2502_v38, %v2494_v28 }
 0x63d   :  { %v1286_v2 = vmul.f32 %v2504_v23, %v2500_v57  ;;  %v2506_v19 = vpop.eup %2505 }
 0x63e   :  { %v2508_v51 = vpop.eup %2507  ;;  %v1283_v27 = vmul.f32 %v2506_v19, %v1279_v29 }
 0x63f   :  { %v1284_v14 = vmul.f32 %v2508_v51, %v1280_v42 }
 0x640   :  { %v3222_v18 = vadd.f32 %v1285_v30, %v1283_v27  ;;  %v2510_v1 = vpop.eup %2509 }
 0x641   :  { %v3224_v61 = vadd.f32 %v1286_v2, %v1284_v14  ;;  %v2512_v37 = vpop.eup %2511 }
 0x642   :  { %2513 = vtanh.f32 %v3222_v18 }
 0x643   :  { %2515 = vtanh.f32 %v3224_v61 }
 0x64c   :  { %v2514_v22 = vpop.eup %2513 }
 0x64d   :  { %v2516_v5 = vpop.eup %2515  ;;  %v1291_v28 = vmul.f32 %v2514_v22, %v2510_v1 }
 0x64e   :  { %v1292_v41 = vmul.f32 %v2516_v5, %v2512_v37 }
 0x64f   :  { %v1293_v62 = vpack.c.bf16 %v1291_v28, %v1291_v28 }
 0x650   :  { %v1294_v36 = vpack.c.bf16 %v1292_v41, %v1292_v41 }
 0x651   :  { %v1297_v57 = vunpack.c.l.b16 %v1293_v62 }
 0x652   :  { %v1298_v38 = vunpack.c.l.b16 %v1294_v36 }
 0x653   :  { %v1299_v23 = vrot.slane %v1297_v57, 4 }
 0x654   :  { %v1300_v30 = vrot.slane %v1298_v38, 3 }
 0x656   :  { %v1301_v29 = vsel %vm605_vm5, %v1300_v30, %v1299_v23 }
 0x657   :  { %v1302_v2 = vpack.c.b16 %v1301_v29, %v1301_v29 }
 0x659   :  { %1337 = vmatmul.mubr.bf16.vlgmr.msra.gmra.mrb[28].mxu1 %v1302_v2  ;;  %1378 = vmatmul.mubr.bf16.vlgmr.msra.gmra.mrb[24].mxu0 %v1302_v2 }
 0x65a   :  { %1480 = vmatpush1.bf16.msra.mxu1 %v2853_v45  ;;  %1521 = vmatpush1.bf16.msra.mxu0 %v2855_v46 }
 0x65b   :  { %1481 = vmatprep.subr.bf16.mxu1 %v2858_v54  ;;  %1522 = vmatprep.subr.bf16.mxu0 %v2860_v55 }
 0x65c   :  { %1511 = vmatprep.mubr.bf16.mxu1 %v3496_v26  ;;  %1552 = vmatprep.mubr.bf16.mxu0 %v3496_v26 }
 0x65e   :  { %1482 = vmatpush1.bf16.msra.mxu1 %v2867_v59  ;;  %1523 = vmatpush1.bf16.msra.mxu0 %v2869_v60 }
 0x65f   :  { %1483 = vmatprep.subr.bf16.mxu1 %v2873_v63  ;;  %1524 = vmatprep.subr.bf16.mxu0 %v2875_v0 }
 0x662   :  { %1484 = vmatpush1.bf16.msra.mxu1 %v2883_v7  ;;  %1525 = vmatpush1.bf16.msra.mxu0 %v2885_v8 }
 0x663   :  { %1485 = vmatprep.subr.bf16.mxu1 %v2889_v11  ;;  %1526 = vmatprep.subr.bf16.mxu0 %v2891_v12 }
 0x666   :  { %1486 = vmatpush1.bf16.msra.mxu1 %v2897_v20  ;;  %1527 = vmatpush1.bf16.msra.mxu0 %v2899_v21 }
 0x667   :  { %1487 = vmatprep.subr.bf16.mxu1 %v2903_v24  ;;  %1528 = vmatprep.subr.bf16.mxu0 %v2905_v25 }
 0x66a   :  { %1488 = vmatpush1.bf16.msra.mxu1 %v2909_v32  ;;  %1529 = vmatpush1.bf16.msra.mxu0 %v2911_v34 }
 0x66b   :  { %1489 = vmatprep.subr.bf16.mxu1 %v2915_v39  ;;  %1530 = vmatprep.subr.bf16.mxu0 %v2917_v40 }
 0x66e   :  { %1490 = vmatpush1.bf16.msra.mxu1 %v2921_v49  ;;  %1531 = vmatpush1.bf16.msra.mxu0 %v2923_v50 }
 0x66f   :  { %1491 = vmatprep.subr.bf16.mxu1 %v2927_v53  ;;  %1532 = vmatprep.subr.bf16.mxu0 %v2929_v56 }
 0x672   :  { %1492 = vmatpush1.bf16.msra.mxu1 %v2933_v3  ;;  %1533 = vmatpush1.bf16.msra.mxu0 %v2935_v4 }
 0x673   :  { %1493 = vmatprep.subr.bf16.mxu1 %v2939_v6  ;;  %1534 = vmatprep.subr.bf16.mxu0 %v2941_v9 }
 0x676   :  { %1494 = vmatpush1.bf16.msra.mxu1 %v2945_v15  ;;  %1535 = vmatpush1.bf16.msra.mxu0 %v2947_v16 }
 0x677   :  { %1654 = vmatprep.subr.bf16.mxu1 %v2845_v33  ;;  %1695 = vmatprep.subr.bf16.mxu0 %v2847_v35 }
 0x72c   :  { %v1338_v52 = vpop.f32.mrb[28].mxu1  ;;  %v1379_v19 = vpop.f32.mrb[24].mxu0 }
 0x72d   :  { %v1390_v42 = vrot.slane %v1338_v52, 3  ;;  %v1394_v31 = vrot.slane %v1338_v52, 4  ;;  %v1340_v51 = vpop.f32.mrb[29].mxu1  ;;  %v1381_v27 = vpop.f32.mrb[25].mxu0  ;;  %v1392_v38 = vrot.slane %v1379_v19, 3  ;;  %v1396_v23 = vrot.slane %v1379_v19, 4 }
 0x72e   :  { %v1391_v14 = vrot.slane %v1340_v51, 3  ;;  %v1395_v1 = vrot.slane %v1340_v51, 4  ;;  %v1342_v37 = vpop.f32.mrb[30].mxu1  ;;  %v1383_v22 = vpop.f32.mrb[26].mxu0  ;;  %v1393_v2 = vrot.slane %v1381_v27, 3 }
 0x72f   :  { %v1406_v5 = vadd.f32 %v1390_v42, %v2994_v47  ;;  %v1410_v28 = vadd.f32 %v1394_v31, %v2998_v58  ;;  %v1343_v41 = vpop.f32.mrb[31].mxu1  ;;  %v1384_v62 = vpop.f32.mrb[27].mxu0  ;;  %v1408_v52 = vadd.f32 %v1392_v38, %v3006_v44  ;;  %v1412_v42 = vadd.f32 %v1396_v23, %v3008_v43 }
 0x730   :  { %v1407_v33 = vadd.f32 %v1391_v14, %v2996_v48  ;;  %v1411_v35 = vadd.f32 %v1395_v1, %v3001_v10  ;;  %v1397_v31 = vrot.slane %v1381_v27, 4  ;;  %v1409_v51 = vadd.f32 %v1393_v2, %v3011_v17 }
 0x731   :  { %v2159_v36 = vmul.f32 -1.442695, %v1406_v5  ;;  %v2162_v57 = vmul.f32 -1.442695, %v1410_v28  ;;  %v2161_v14 = vmul.f32 -1.442695, %v1408_v52 }
 0x732   :  { %v2160_v30 = vmul.f32 -1.442695, %v1407_v33  ;;  %v2163_v29 = vmul.f32 -1.442695, %v1411_v35  ;;  %v2164_v1 = vmul.f32 -1.442695, %v1412_v42  ;;  %v1413_v37 = vadd.f32 %v1397_v31, %v3015_v13 }
 0x733   :  { %2517 = vpow2.f32 %v2159_v36  ;;  %v1454_v52 = vrot.slane %v3222_v18, 7 }
 0x734   :  { %2519 = vpow2.f32 %v2162_v57 }
 0x735   :  { %2521 = vpow2.f32 %v2160_v30 }
 0x736   :  { %2523 = vpow2.f32 %v2163_v29 }
 0x737   :  { %2525 = vtanh.f32 %v1409_v51  ;;  %v1455_v51 = vrot.slane %v3224_v61, 7 }
 0x738   :  { %2527 = vpow2.f32 %v2161_v14 }
 0x739   :  { %2529 = vpow2.f32 %v2164_v1 }
 0x73a   :  { %2531 = vtanh.f32 %v1413_v37 }
 0x73d   :  { %v2518_v19 = vpop.eup %2517 }
 0x73e   :  { %v2520_v22 = vpop.eup %2519  ;;  %v1432_v5 = vadd.f32 1.0, %v2518_v19 }
 0x73f   :  { %v1435_v28 = vadd.f32 1.0, %v2520_v22  ;;  %v2522_v41 = vpop.eup %2521 }
 0x740   :  { %2533 = vrcp.f32 %v1432_v5  ;;  %v2524_v62 = vpop.eup %2523  ;;  %v1433_v27 = vadd.f32 1.0, %v2522_v41 }
 0x741   :  { %2535 = vrcp.f32 %v1435_v28  ;;  %v1436_v33 = vadd.f32 1.0, %v2524_v62  ;;  %v2526_v35 = vpop.eup %2525 }
 0x742   :  { %2537 = vrcp.f32 %v1433_v27  ;;  %v2528_v36 = vpop.eup %2527 }
 0x743   :  { %2539 = vrcp.f32 %v1436_v33  ;;  %v2530_v57 = vpop.eup %2529  ;;  %v1434_v42 = vadd.f32 1.0, %v2528_v36 }
 0x744   :  { %v2532_v38 = vpop.eup %2531  ;;  %v1437_v14 = vadd.f32 1.0, %v2530_v57 }
 0x745   :  { %2541 = vrcp.f32 %v1434_v42 }
 0x746   :  { %2543 = vrcp.f32 %v1437_v14 }
 0x74a   :  { %v2534_v23 = vpop.eup %2533 }
 0x74b   :  { %v2536_v30 = vpop.eup %2535  ;;  %v1460_v29 = vmul.f32 %v2534_v23, %v2526_v35 }
 0x74c   :  { %v1461_v2 = vmul.f32 %v2536_v30, %v2532_v38  ;;  %v2538_v31 = vpop.eup %2537 }
 0x74d   :  { %v2540_v1 = vpop.eup %2539  ;;  %v1458_v37 = vmul.f32 %v2538_v31, %v1454_v52 }
 0x74e   :  { %v1459_v19 = vmul.f32 %v2540_v1, %v1455_v51 }
 0x74f   :  { %v3273_v22 = vadd.f32 %v1460_v29, %v1458_v37  ;;  %v2542_v28 = vpop.eup %2541 }
 0x750   :  { %v3275_v5 = vadd.f32 %v1461_v2, %v1459_v19  ;;  %v2544_v18 = vpop.eup %2543 }
 0x751   :  { %2545 = vtanh.f32 %v3273_v22 }
 0x752   :  { %2547 = vtanh.f32 %v3275_v5 }
 0x75b   :  { %v2546_v41 = vpop.eup %2545 }
 0x75c   :  { %v2548_v62 = vpop.eup %2547  ;;  %v1466_v27 = vmul.f32 %v2546_v41, %v2542_v28 }
 0x75d   :  { %v1467_v61 = vmul.f32 %v2548_v62, %v2544_v18 }
 0x75e   :  { %v1468_v33 = vpack.c.bf16 %v1466_v27, %v1466_v27 }
 0x75f   :  { %v1469_v35 = vpack.c.bf16 %v1467_v61, %v1467_v61 }
 0x760   :  { %v1472_v36 = vunpack.c.l.b16 %v1468_v33  ;;  %v1629_v33 = vrot.slane %v3273_v22, 7 }
 0x761   :  { %v1473_v57 = vunpack.c.l.b16 %v1469_v35 }
 0x762   :  { %v1474_v38 = vrot.slane %v1472_v36, 5 }
 0x763   :  { %v1475_v23 = vrot.slane %v1473_v57, 4  ;;  %v1630_v57 = vrot.slane %v3275_v5, 7 }
 0x765   :  { %v1476_v30 = vsel %vm605_vm5, %v1475_v23, %v1474_v38 }
 0x766   :  { %v1477_v29 = vpack.c.b16 %v1476_v30, %v1476_v30 }
 0x768   :  { %1512 = vmatmul.mubr.bf16.vlgmr.msra.gmra.mrb[32].mxu1 %v1477_v29  ;;  %1553 = vmatmul.mubr.bf16.vlgmr.msra.gmra.mrb[28].mxu0 %v1477_v29 }
 0x769   :  { %1655 = vmatpush1.bf16.msra.mxu1 %v2853_v45  ;;  %1696 = vmatpush1.bf16.msra.mxu0 %v2855_v46 }
 0x76a   :  { %1656 = vmatprep.subr.bf16.mxu1 %v2858_v54  ;;  %1697 = vmatprep.subr.bf16.mxu0 %v2860_v55 }
 0x76b   :  { %1686 = vmatprep.mubr.bf16.mxu1 %v3496_v26  ;;  %1727 = vmatprep.mubr.bf16.mxu0 %v3496_v26 }
 0x76d   :  { %1657 = vmatpush1.bf16.msra.mxu1 %v2867_v59  ;;  %1698 = vmatpush1.bf16.msra.mxu0 %v2869_v60 }
 0x76e   :  { %1658 = vmatprep.subr.bf16.mxu1 %v2873_v63  ;;  %1699 = vmatprep.subr.bf16.mxu0 %v2875_v0 }
 0x771   :  { %1659 = vmatpush1.bf16.msra.mxu1 %v2883_v7  ;;  %1700 = vmatpush1.bf16.msra.mxu0 %v2885_v8 }
 0x772   :  { %1660 = vmatprep.subr.bf16.mxu1 %v2889_v11  ;;  %1701 = vmatprep.subr.bf16.mxu0 %v2891_v12 }
 0x775   :  { %1661 = vmatpush1.bf16.msra.mxu1 %v2897_v20  ;;  %1702 = vmatpush1.bf16.msra.mxu0 %v2899_v21 }
 0x776   :  { %1662 = vmatprep.subr.bf16.mxu1 %v2903_v24  ;;  %1703 = vmatprep.subr.bf16.mxu0 %v2905_v25 }
 0x779   :  { %1663 = vmatpush1.bf16.msra.mxu1 %v2909_v32  ;;  %1704 = vmatpush1.bf16.msra.mxu0 %v2911_v34 }
 0x77a   :  { %1664 = vmatprep.subr.bf16.mxu1 %v2915_v39  ;;  %1705 = vmatprep.subr.bf16.mxu0 %v2917_v40 }
 0x77d   :  { %1665 = vmatpush1.bf16.msra.mxu1 %v2921_v49  ;;  %1706 = vmatpush1.bf16.msra.mxu0 %v2923_v50 }
 0x77e   :  { %1666 = vmatprep.subr.bf16.mxu1 %v2927_v53  ;;  %1707 = vmatprep.subr.bf16.mxu0 %v2929_v56 }
 0x781   :  { %1667 = vmatpush1.bf16.msra.mxu1 %v2933_v3  ;;  %1708 = vmatpush1.bf16.msra.mxu0 %v2935_v4 }
 0x782   :  { %1668 = vmatprep.subr.bf16.mxu1 %v2939_v6  ;;  %1709 = vmatprep.subr.bf16.mxu0 %v2941_v9 }
 0x785   :  { %1669 = vmatpush1.bf16.msra.mxu1 %v2945_v15  ;;  %1710 = vmatpush1.bf16.msra.mxu0 %v2947_v16 }
 0x83b   :  { %v1513_v45 = vpop.f32.mrb[32].mxu1  ;;  %v1554_v46 = vpop.f32.mrb[28].mxu0 }
 0x83c   :  { %v1565_v54 = vrot.slane %v1513_v45, 2  ;;  %v1569_v55 = vrot.slane %v1513_v45, 3  ;;  %v1515_v59 = vpop.f32.mrb[33].mxu1  ;;  %v1556_v60 = vpop.f32.mrb[29].mxu0  ;;  %v1567_v39 = vrot.slane %v1554_v46, 2  ;;  %v1571_v40 = vrot.slane %v1554_v46, 3 }
 0x83d   :  { %v1566_v63 = vrot.slane %v1515_v59, 2  ;;  %v1570_v0 = vrot.slane %v1515_v59, 3  ;;  %v1517_v7 = vpop.f32.mrb[34].mxu1  ;;  %v1558_v8 = vpop.f32.mrb[30].mxu0  ;;  %v1568_v53 = vrot.slane %v1556_v60, 2  ;;  %v1572_v4 = vrot.slane %v1556_v60, 3 }
 0x83e   :  { %v1581_v11 = vadd.f32 %v1565_v54, %v2994_v47  ;;  %v1585_v12 = vadd.f32 %v1569_v55, %v2998_v58  ;;  %v1518_v20 = vpop.f32.mrb[35].mxu1  ;;  %v1559_v21 = vpop.f32.mrb[31].mxu0  ;;  %v1583_v56 = vadd.f32 %v1567_v39, %v3006_v44  ;;  %v1587_v3 = vadd.f32 %v1571_v40, %v3008_v43  ;;  %v1820_v39 = vld [vmem:[%s3483_s6 + $0x10] sm:$0xff]  ;;  %v1821_v40 = vld [vmem:[%s3483_s6 + $0x18] sm:$0xff] }
 0x83f   :  { %v1582_v24 = vadd.f32 %v1566_v63, %v2996_v48  ;;  %v1586_v25 = vadd.f32 %v1570_v0, %v3001_v10  ;;  %v1584_v6 = vadd.f32 %v1568_v53, %v3011_v17  ;;  %v1588_v16 = vadd.f32 %v1572_v4, %v3015_v13  ;;  %v1823_v53 = vld [vmem:[%s3483_s6 + $0x28] sm:$0xff]  ;;  %v1825_v4 = vld [vmem:[%s3483_s6 + $0x38] sm:$0xff] }
 0x840   :  { %v2165_v32 = vmul.f32 -1.442695, %v1581_v11  ;;  %v2168_v34 = vmul.f32 -1.442695, %v1585_v12  ;;  %v2167_v9 = vmul.f32 -1.442695, %v1583_v56 }
 0x841   :  { %v2166_v49 = vmul.f32 -1.442695, %v1582_v24  ;;  %v2169_v50 = vmul.f32 -1.442695, %v1586_v25  ;;  %v2170_v15 = vmul.f32 -1.442695, %v1587_v3 }
 0x842   :  { %2549 = vpow2.f32 %v2165_v32  ;;  %v1818_v24 = vld [vmem:[%s3483_s6] sm:$0xff]  ;;  %v1819_v25 = vld [vmem:[%s3483_s6 + $0x8] sm:$0xff]  ;;  %v1824_v3 = vld [vmem:[%s3483_s6 + $0x30] sm:$0xff] }
 0x843   :  { %2551 = vpow2.f32 %v2168_v34  ;;  %v2310_v32 = vpack.c.bf16 %v1819_v25, %v1818_v24  ;;  %v2691_v34 = vmov 0.0|0.0  }
 0x844   :  { %2553 = vpow2.f32 %v2166_v49  ;;  %2309 = vmatprep.subr.bf16.mxu0 %v2691_v34  ;;  %2305 = vmatprep.subr.bf16.mxu1 %v2691_v34  ;;  %v2313_v49 = vpack.c.bf16 %v1821_v40, %v1820_v39 }
 0x845   :  { %2555 = vpow2.f32 %v2169_v50  ;;  %v1822_v50 = vld [vmem:[%s3483_s6 + $0x20] sm:$0xff] }
 0x846   :  { %2557 = vtanh.f32 %v1584_v6  ;;  %v2316_v56 = vpack.c.bf16 %v1823_v53, %v1822_v50  ;;  %v2319_v6 = vpack.c.bf16 %v1825_v4, %v1824_v3 }
 0x847   :  { %2559 = vpow2.f32 %v2167_v9 }
 0x848   :  { %2561 = vpow2.f32 %v2170_v15  ;;  %v1826_v15 = vld [vmem:[%s3483_s6 + $0x40] sm:$0xff] }
 0x849   :  { %2563 = vtanh.f32 %v1588_v16  ;;  %v1827_v16 = vld [vmem:[%s3483_s6 + $0x48] sm:$0xff] }
 0x84c   :  { %v2550_v26 = vpop.eup %2549 }
 0x84d   :  { %v2552_v2 = vpop.eup %2551  ;;  %v1607_v52 = vadd.f32 1.0, %v2550_v26  ;;  %v1828_v26 = vld [vmem:[%s3483_s6 + $0x50] sm:$0xff] }
 0x84e   :  { %v1610_v42 = vadd.f32 1.0, %v2552_v2  ;;  %v2554_v31 = vpop.eup %2553  ;;  %v2322_v2 = vpack.c.bf16 %v1827_v16, %v1826_v15 }
 0x84f   :  { %2565 = vrcp.f32 %v1607_v52  ;;  %v2556_v51 = vpop.eup %2555  ;;  %v1608_v14 = vadd.f32 1.0, %v2554_v31  ;;  %v1829_v52 = vld [vmem:[%s3483_s6 + $0x58] sm:$0xff]  ;;  %v1836_v31 = vld [vmem:[%s3484_s7 + $0x8] sm:$0x1f] }
 0x850   :  { %2567 = vrcp.f32 %v1610_v42  ;;  %v1611_v1 = vadd.f32 1.0, %v2556_v51  ;;  %v2558_v37 = vpop.eup %2557  ;;  %v1835_v42 = vld [vmem:[%s3484_s7] sm:$0xff]  ;;  %v3499_v51 = vmov 0.0   ;;  %s2693_s7 = smov [#allocation6]  }
 0x851   :  { %2569 = vrcp.f32 %v1608_v14  ;;  %v2560_v19 = vpop.eup %2559  ;;  %v2306_v14 = vpack.c.bf16 %v1836_v31, %v1835_v42  ;;  %s2106_s4 = sshll.u32 %s2693_s7, 4  ;;  %s2107_s4 = int_to_ptr.vmem [resolvable:$true] %s2106_s4 }
 0x852   :  { %2571 = vrcp.f32 %v1611_v1  ;;  %v2562_v28 = vpop.eup %2561  ;;  %v1609_v35 = vadd.f32 1.0, %v2560_v19  ;;  %v2325_v1 = vpack.c.bf16 %v1829_v52, %v1828_v26  ;;  %v1830_v19 = vld [vmem:[%s3483_s6 + $0x60] sm:$0xff]  ;;  %s2635_s22 = scalar_lea.vmem %s2107_s4, 256  ;;  %p2640_p9 = scmp.lt.s32.totalorder %s2107_s4, %s2107_s4 }
 0x853   :  { %v2564_v18 = vpop.eup %2563  ;;  %v1612_v38 = vadd.f32 1.0, %v2562_v28  ;;  %v1831_v28 = vld [vmem:[%s3483_s6 + $0x68] sm:$0xff]  ;;  %p2636_p8 = scmp.ne.s32.totalorder %s2107_s4, %s2635_s22  ;;  %p2641_p10 = scmp.lt.s32.totalorder %s2635_s22, %s2635_s22 }
 0x854   :  { %2573 = vrcp.f32 %v1609_v35  ;;  %v2002_v35 = vld [vmem:[%s3486_s9 + $0x10] sm:$0xff] }
 0x855   :  { %2575 = vrcp.f32 %v1612_v38  ;;  %p2642_p11 = por %p2641_p10, %p2640_p9 }
 0x857   :  { %p2643_p12 = pnand %p2642_p11, %p2636_p8 }
 0x859   :  { %v2566_v41 = vpop.eup %2565 }
 0x85a   :  { %v2568_v62 = vpop.eup %2567  ;;  %v1635_v27 = vmul.f32 %v2566_v41, %v2558_v37  ;;  %v1834_v37 = vld [vmem:[%s3479_s2] sm:$0x3]  ;;  %v1832_v41 = vld [vmem:[%s3483_s6 + $0x70] sm:$0xff] }
 0x85b   :  { %v1636_v61 = vmul.f32 %v2568_v62, %v2564_v18  ;;  %v2570_v36 = vpop.eup %2569  ;;  %v2328_v18 = vpack.c.bf16 %v1831_v28, %v1830_v19  ;;  %v1833_v62 = vld [vmem:[%s3483_s6 + $0x78] sm:$0xff] }
 0x85c   :  { %v2572_v23 = vpop.eup %2571  ;;  %v1633_v30 = vmul.f32 %v2570_v36, %v1629_v33  ;;  %v2001_v33 = vld [vmem:[%s3486_s9 + $0x8] sm:$0xff] }
 0x85d   :  { %v1634_v29 = vmul.f32 %v2572_v23, %v1630_v57  ;;  %v2003_v57 = vld [vmem:[%s3486_s9 + $0x18] sm:$0xff] }
 0x85e   :  { %v3322_v45 = vadd.f32 %v1635_v27, %v1633_v30  ;;  %v2574_v54 = vpop.eup %2573  ;;  %v2331_v27 = vpack.c.bf16 %v1833_v62, %v1832_v41  ;;  %v2337_v38 = vpack.c.bf16 %v2003_v57, %v2002_v35 }
 0x85f   :  { %v3324_v46 = vadd.f32 %v1636_v61, %v1634_v29  ;;  %v2576_v22 = vpop.eup %2575  ;;  %v2000_v61 = vld [vmem:[%s3486_s9] sm:$0xff] }
 0x860   :  { %2577 = vtanh.f32 %v3322_v45  ;;  %v2334_v36 = vpack.c.bf16 %v2001_v33, %v2000_v61 }
 0x861   :  { %2579 = vtanh.f32 %v3324_v46  ;;  %v1805_v19 = vrot.slane %v3324_v46, 7 }
 0x86a   :  { %v2578_v55 = vpop.eup %2577 }
 0x86b   :  { %v2580_v59 = vpop.eup %2579  ;;  %v1641_v60 = vmul.f32 %v2578_v55, %v2574_v54 }
 0x86c   :  { %v1642_v5 = vmul.f32 %v2580_v59, %v2576_v22 }
 0x86d   :  { %v1643_v63 = vpack.c.bf16 %v1641_v60, %v1641_v60 }
 0x86e   :  { %v1644_v0 = vpack.c.bf16 %v1642_v5, %v1642_v5 }
 0x86f   :  { %v1647_v7 = vunpack.c.l.b16 %v1643_v63 }
 0x870   :  { %v1648_v8 = vunpack.c.l.b16 %v1644_v0 }
 0x871   :  { %v1649_v11 = vrot.slane %v1647_v7, 6 }
 0x872   :  { %v1650_v12 = vrot.slane %v1648_v8, 5 }
 0x874   :  { %v1651_v20 = vsel %vm605_vm5, %v1650_v12, %v1649_v11 }
 0x875   :  { %v1652_v21 = vpack.c.b16 %v1651_v20, %v1651_v20 }
 0x877   :  { %1687 = vmatmul.mubr.bf16.vlgmr.msra.gmra.mrb[36].mxu1 %v1652_v21  ;;  %1728 = vmatmul.mubr.bf16.vlgmr.msra.gmra.mrb[32].mxu0 %v1652_v21 }
 0x878   :  { %2311 = vmatpush3.bf16.msra.mxu0 %v2310_v32  ;;  %2226 = vmatprep.mubr.msk.f32.mxu1 %vm2692_vm8, %v3499_v51 }
 0x879   :  { %2312 = vmatprep.subr.bf16.mxu0 %v2691_v34  ;;  %2261 = vmatprep.mubr.msk.f32.mxu0 %vm2692_vm8, %v3499_v51 }
 0x87a   :  { %2308 = vmatpush3.bf16.msk.msra.mxu1 %vm3359_vm7, %v2306_v14  ;;  %v1804_v14 = vrot.slane %v3322_v45, 7 }
 0x87b   :  { %2333 = vmatprep.subr.bf16.mxu1 %v2691_v34 }
 0x87c   :  { %2314 = vmatpush3.bf16.msra.mxu0 %v2313_v49 }
 0x87d   :  { %2315 = vmatprep.subr.bf16.mxu0 %v2691_v34 }
 0x87f   :  { %2227 = vmatmul.mubr.msk.f32.vlgmr.msra.gmra.mrb[6].mxu1 %vm1837_vm9, %v1834_v37 }
 0x880   :  { %2317 = vmatpush3.bf16.msra.mxu0 %v2316_v56  ;;  %2280 = vmatprep.mubr.msk.f32.mxu1 %vm2692_vm8, %v3499_v51 }
 0x881   :  { %2318 = vmatprep.subr.bf16.mxu0 %v2691_v34  ;;  %2335 = vmatpush3.bf16.msra.mxu1 %v2334_v36 }
 0x882   :  { %2336 = vmatprep.subr.bf16.mxu1 %v2691_v34 }
 0x884   :  { %2320 = vmatpush3.bf16.msra.mxu0 %v2319_v6 }
 0x885   :  { %2321 = vmatprep.subr.bf16.mxu0 %v2691_v34  ;;  %2338 = vmatpush3.bf16.msra.mxu1 %v2337_v38 }
 0x886   :  { %2339 = vmatprep.subr.bf16.mxu1 %v2691_v34 }
 0x888   :  { %2323 = vmatpush3.bf16.msra.mxu0 %v2322_v2 }
 0x889   :  { %2324 = vmatprep.subr.bf16.mxu0 %v2691_v34 }
 0x88c   :  { %2326 = vmatpush3.bf16.msra.mxu0 %v2325_v1 }
 0x88d   :  { %2327 = vmatprep.subr.bf16.mxu0 %v2691_v34 }
 0x890   :  { %2329 = vmatpush3.bf16.msra.mxu0 %v2328_v18 }
 0x891   :  { %2330 = vmatprep.subr.bf16.mxu0 %v2691_v34 }
 0x894   :  { %2332 = vmatpush3.bf16.msra.mxu0 %v2331_v27 }
 0x94a   :  { %v1688_v23 = vpop.f32.mrb[36].mxu1  ;;  %v1729_v30 = vpop.f32.mrb[32].mxu0 }
 0x94b   :  { %v1740_v29 = vrot.slane %v1688_v23, 1  ;;  %v1744_v54 = vrot.slane %v1688_v23, 2  ;;  %v1690_v22 = vpop.f32.mrb[37].mxu1  ;;  %v1731_v55 = vpop.f32.mrb[33].mxu0  ;;  %v1742_v25 = vrot.slane %v1729_v30, 1  ;;  %v1746_v32 = vrot.slane %v1729_v30, 2 }
 0x94c   :  { %v1741_v59 = vrot.slane %v1690_v22, 1  ;;  %v1745_v60 = vrot.slane %v1690_v22, 2  ;;  %v1692_v5 = vpop.f32.mrb[38].mxu1  ;;  %v1733_v63 = vpop.f32.mrb[34].mxu0  ;;  %v1743_v49 = vrot.slane %v1731_v55, 1  ;;  %v2004_v22 = vld [vmem:[%s3486_s9 + $0x20] sm:$0xff] }
 0x94d   :  { %v1756_v0 = vadd.f32 %v1740_v29, %v2994_v47  ;;  %v1760_v7 = vadd.f32 %v1744_v54, %v2998_v58  ;;  %v1693_v8 = vpop.f32.mrb[39].mxu1  ;;  %v1734_v11 = vpop.f32.mrb[35].mxu0  ;;  %v1758_v50 = vadd.f32 %v1742_v25, %v3006_v44  ;;  %v1762_v47 = vadd.f32 %v1746_v32, %v3008_v43  ;;  %v2007_v5 = vld [vmem:[%s3486_s9 + $0x38] sm:$0xff] }
 0x94e   :  { %v1757_v12 = vadd.f32 %v1741_v59, %v2996_v48  ;;  %v1761_v20 = vadd.f32 %v1745_v60, %v3001_v10  ;;  %v1747_v58 = vrot.slane %v1731_v55, 2  ;;  %v1759_v48 = vadd.f32 %v1743_v49, %v3011_v17  ;;  %v2005_v55 = vld [vmem:[%s3486_s9 + $0x28] sm:$0xff]  ;;  %v2006_v60 = vld [vmem:[%s3486_s9 + $0x30] sm:$0xff] }
 0x94f   :  { %v2171_v21 = vmul.f32 -1.442695, %v1756_v0  ;;  %v2174_v24 = vmul.f32 -1.442695, %v1760_v7  ;;  %v2173_v53 = vmul.f32 -1.442695, %v1758_v50  ;;  %v2340_v59 = vpack.c.bf16 %v2005_v55, %v2004_v22 }
 0x950   :  { %v2172_v39 = vmul.f32 -1.442695, %v1757_v12  ;;  %v2175_v40 = vmul.f32 -1.442695, %v1761_v20  ;;  %v2176_v10 = vmul.f32 -1.442695, %v1762_v47  ;;  %v1763_v56 = vadd.f32 %v1747_v58, %v3015_v13 }
 0x951   :  { %2581 = vpow2.f32 %v2171_v21  ;;  %2341 = vmatpush3.bf16.msra.mxu1 %v2340_v59  ;;  %v2343_v63 = vpack.c.bf16 %v2007_v5, %v2006_v60  ;;  %v2179_v7 = vld [vmem:[%s3485_s8] ss:$0 sm:$0xff] }
 0x952   :  { %2583 = vpow2.f32 %v2174_v24  ;;  %v1911_v29 = vpop.f32.mrb[6].mxu1  ;;  %2342 = vmatprep.subr.bf16.mxu1 %v2691_v34 }
 0x953   :  { %2585 = vpow2.f32 %v2172_v39  ;;  %v2228_v54 = vpop.f32.mrb[7].mxu1 }
 0x954   :  { %2587 = vpow2.f32 %v2175_v40 }
 0x955   :  { %2589 = vtanh.f32 %v1759_v48  ;;  %2344 = vmatpush3.bf16.msra.mxu1 %v2343_v63 }
 0x956   :  { %2591 = vpow2.f32 %v2173_v53 }
 0x957   :  { %2593 = vpow2.f32 %v2176_v10 }
 0x958   :  { %2595 = vtanh.f32 %v1763_v56 }
 0x95b   :  { %v2582_v3 = vpop.eup %2581 }
 0x95c   :  { %v2584_v4 = vpop.eup %2583  ;;  %v1782_v6 = vadd.f32 1.0, %v2582_v3 }
 0x95d   :  { %v1785_v9 = vadd.f32 1.0, %v2584_v4  ;;  %v2586_v44 = vpop.eup %2585 }
 0x95e   :  { %2597 = vrcp.f32 %v1782_v6  ;;  %v2588_v43 = vpop.eup %2587  ;;  %v1783_v15 = vadd.f32 1.0, %v2586_v44 }
 0x95f   :  { %2599 = vrcp.f32 %v1785_v9  ;;  %v1786_v16 = vadd.f32 1.0, %v2588_v43  ;;  %v2590_v17 = vpop.eup %2589 }
 0x960   :  { %2601 = vrcp.f32 %v1783_v15  ;;  %v2592_v26 = vpop.eup %2591 }
 0x961   :  { %2603 = vrcp.f32 %v1786_v16  ;;  %v2594_v2 = vpop.eup %2593  ;;  %v1784_v1 = vadd.f32 1.0, %v2592_v26 }
 0x962   :  { %v2596_v13 = vpop.eup %2595  ;;  %v1787_v28 = vadd.f32 1.0, %v2594_v2 }
 0x963   :  { %2605 = vrcp.f32 %v1784_v1 }
 0x964   :  { %2607 = vrcp.f32 %v1787_v28 }
 0x968   :  { %v2598_v52 = vpop.eup %2597 }
 0x969   :  { %v2600_v42 = vpop.eup %2599  ;;  %v1810_v31 = vmul.f32 %v2598_v52, %v2590_v17 }
 0x96a   :  { %v1811_v51 = vmul.f32 %v2600_v42, %v2596_v13  ;;  %v2602_v37 = vpop.eup %2601 }
 0x96b   :  { %v2604_v18 = vpop.eup %2603  ;;  %v1808_v41 = vmul.f32 %v2602_v37, %v1804_v14 }
 0x96c   :  { %v1809_v62 = vmul.f32 %v2604_v18, %v1805_v19 }
 0x96d   :  { %v1812_v27 = vadd.f32 %v1810_v31, %v1808_v41  ;;  %v2606_v33 = vpop.eup %2605 }
 0x96e   :  { %v1813_v61 = vadd.f32 %v1811_v51, %v1809_v62  ;;  %v2608_v35 = vpop.eup %2607 }
 0x96f   :  { %2609 = vtanh.f32 %v1812_v27 }
 0x970   :  { %2611 = vtanh.f32 %v1813_v61 }
 0x979   :  { %v2610_v36 = vpop.eup %2609 }
 0x97a   :  { %v2612_v57 = vpop.eup %2611  ;;  %v1816_v38 = vmul.f32 %v2610_v36, %v2606_v33 }
 0x97b   :  { %v1817_v45 = vmul.f32 %v2612_v57, %v2608_v35 }
 0x97c   :  { %v1917_v23 = vrot.slane %v1816_v38, 7 }
 0x97d   :  { %v1918_v30 = vrot.slane %v1817_v45, 6 }
 0x97f   :  { %v1919_v46 = vsel %vm605_vm5, %v1918_v30, %v1917_v23 }
 0x980   :  { %2262 = vmatmul.mubr.f32.vlgmr.msra.gmra.mrb[36].mxu0 %v1919_v46 }
 0xa53   :  { %v1987_v0 = vpop.f32.mrb[36].mxu0 }
 0xa54   :  { %v1988_v8 = vadd.f32 %v1987_v0, %v1911_v29  ;;  %v2263_v11 = vpop.f32.mrb[37].mxu0 }
 0xa56   :  { %v1998_v12 = vadd.f32 %v2179_v7, %v1988_v8 }
 0xa58   :  { %v1999_v34 = vmax.f32 %v1998_v12, 0.0 }
 0xa5a   :  { %2281 = vmatmul.mubr.msk.f32.vlgmr.msra.gmra.mrb[40].mxu1 %vm2015_vm10, %v1999_v34 }
 0xa5b   :  { %2646 = shalt.err (!%p2643_p12)
}
 0xa5c   :  { %s2647_s8 = scalar_lea.hbm %s3489_s12, 256 }
 0xa5d   :  { %p2648_p13 = scmp.ne.s32.totalorder %s3489_s12, %s2647_s8  ;;  %p2651_p0 = scmp.lt.u32.totalorder %s2647_s8, %s3489_s12 }
 0xa5f   :  { %p2653_p1 = pnand %p2651_p0, %p2648_p13 }
 0xa61   :  { %2656 = shalt.err (!%p2653_p1)
}
 0xa62   :  { %s2694_s27 = smov 128   ;;  %s2695_s1 = smov 8   ;;  %v2180_v20 = vld [vmem:[%s3487_s10] ss:$0 sm:$0xff]  ;;  %vm2089_vm11 = vcmask 9216  }
 0xa63   :  { %2112 = dma.vmem_to_hbm [thread:$0]  %s2107_s4, 256, %s3489_s12, [#allocation7], %s2694_s27, %s2694_s27, %s2695_s1  }
 0xa64   :  { %s2696_s14 = smov [#allocation5]  }
 0xa65   :  { %s2097_s6 = sshll.u32 %s2696_s14, 4  ;;  %s2098_s6 = int_to_ptr.vmem [resolvable:$true] %s2097_s6 }
 0xa66   :  { %s2657_s15 = scalar_lea.vmem %s2098_s6, 32  ;;  %p2662_p3 = scmp.lt.s32.totalorder %s2098_s6, %s2098_s6 }
 0xa67   :  { %p2658_p2 = scmp.ne.s32.totalorder %s2098_s6, %s2657_s15  ;;  %p2663_p4 = scmp.lt.s32.totalorder %s2657_s15, %s2657_s15 }
 0xa69   :  { %p2664_p5 = por %p2663_p4, %p2662_p3 }
 0xa6b   :  { %p2665_p6 = pnand %p2664_p5, %p2658_p2 }
 0xb2d   :  { %v2085_v21 = vpop.f32.mrb[40].mxu1 }
 0xb2e   :  { %v2086_v24 = vadd.f32 %v2180_v20, %v2085_v21  ;;  %v2282_v25 = vpop.f32.mrb[41].mxu1 }
 0xb30   :  { %2090 = vst.msk [vmem:[#allocation5] sm:$0x3] %vm2089_vm11, %v2086_v24 }
 0xb31   :  { %2668 = shalt.err (!%p2665_p6)
}
 0xb32   :  { %s2669_s16 = scalar_lea.hbm %s3488_s11, 32 }
 0xb33   :  { %p2670_p7 = scmp.ne.s32.totalorder %s3488_s11, %s2669_s16  ;;  %p2673_p8 = scmp.lt.u32.totalorder %s2669_s16, %s3488_s11 }
 0xb35   :  { %p2675_p9 = pnand %p2673_p8, %p2670_p7 }
 0xb37   :  { %2678 = shalt.err (!%p2675_p9)
}
 0xb38   :  { %2100 = dma.vmem_to_hbm [thread:$0]  %s2098_s6, 32, %s3488_s11, [#allocation4]  }
 0xb39   :  { %2681 = dma.done.wait [#allocation4], 32  }
 0xb3a   :  { %2682 = vsyncadd [#allocation4], 4294967264 }
 0xb3b   :  { %2683 = dma.done.wait [#allocation7], 256  }
 0xb3c   :  { %2684 = vsyncadd [#allocation7], 4294967040 }
 0xb3d   :  { %2119 = vsyncpa [#allocation3], 1 }
 0xb3e   :  { %2120 = vsyncpa [#allocation4], 1 }
 0xb3f   :  { %2121 = vsyncpa [#allocation7], 1 }

</bundles_post_ra>
